<compile_context>
chip_gen: v6e
topology: v6e:2x2x1
jax: 0.10.0
libtpu: 0.0.40
codegen_flags: <defaults>
</compile_context>

<pallas_src>
import functools

import jax
import jax.numpy as jnp
from jax.experimental import pallas as pl
from jax.experimental.pallas import tpu as pltpu


def _make_kernel(C, hidden, out_nc, kw, M_in, M_out, use_res):
    def kernel(xp_ref, w1_ref, w2_ref, w3_ref, b1_ref, b2_ref, b3_ref, out_ref):
        xp = xp_ref[...]          # (NP, C, M_in)        padded patches, spatial on lanes
        w1 = w1_ref[...]          # (NP, hidden, C)      BN1 scale folded in
        w2 = w2_ref[...]          # (NP, hidden, 9)      BN2 scale folded in
        w3 = w3_ref[...]          # (NP, out_nc, hidden) BN3 scale folded in
        b1 = b1_ref[...][:, :, None]   # (1, hidden, 1)
        b2 = b2_ref[...][:, :, None]   # (1, hidden, 1)
        b3 = b3_ref[...][:, :, None]   # (1, out_nc, 1)

        # ---- 1x1 "expand" conv: C broadcast FMAs on the VPU (K=4 is too small
        # for a useful MXU pass).
        h1 = w1[:, :, 0:1] * xp[:, 0:1, :]
        for c in range(1, C):
            h1 = h1 + w1[:, :, c:c + 1] * xp[:, c:c + 1, :]
        h1 = jnp.clip(h1 + b1, 0.0, 6.0)                     # BN1 bias + ReLU6

        # ---- 3x3 depthwise valid conv: 9 lane-shifted MACs over the whole tile.
        # Output stays in the kw-strided "wide" layout (column j>=pw is junk,
        # dropped by the wrapper).
        h2 = w2[:, :, 0:1] * h1[:, :, 0:M_out]
        for t in range(1, 9):
            di, dj = divmod(t, 3)
            s = di * kw + dj
            h2 = h2 + w2[:, :, t:t + 1] * h1[:, :, s:s + M_out]
        h2 = jnp.clip(h2 + b2, 0.0, 6.0)                     # BN2 bias + ReLU6

        # ---- 1x1 "project" conv: hidden broadcast FMAs on the VPU.
        y = w3[:, :, 0:1] * h2[:, 0:1, :]
        for h in range(1, hidden):
            y = y + w3[:, :, h:h + 1] * h2[:, h:h + 1, :]
        y = y + b3                                           # BN3 bias

        if use_res:
            # Center (unpadded) pixel (i, j) of the patch lives at flat padded
            # offset (i+1)*kw + (j+1) = (kw+1) + (i*kw + j) -> reuse xp, no xc DMA.
            y = y + xp[:, :, kw + 1: kw + 1 + M_out]

        out_ref[...] = y.astype(out_ref.dtype)

    return kernel


def hyper_patch_inverted_residual(x, s, bn_params, *, in_nc, out_nc, hidden,
                                  stride=1, patches_per_step=128):
    """Pallas implementation of HyperPatchInvertedResidual.forward(x, s) (eval BN)."""
    assert stride == 1  # TODO(synk): stride=2 depthwise path not implemented
    b, C, H, W = x.shape
    assert C == in_nc
    hp, fh, fw = s.shape[1], s.shape[2], s.shape[3]
    ph, pw = H // fh, W // fw
    kh, kw = ph + 2, pw + 2
    P = b * fh * fw
    use_res = (stride == 1 and in_nc == out_nc)

    M_out = ph * kw            # wide (kw-strided) output row layout
    M_in = kh * kw + 2         # +2 so every tap slice of length M_out is in bounds

    NP = min(P, patches_per_step)
    P_pad = ((P + NP - 1) // NP) * NP

    # ---- glue: reflect pad + extract overlapping patches -> (P, C, kh*kw)
    # channels on sublanes, flattened patch spatial on lanes (lane-dense).
    xpad = jnp.pad(x, ((0, 0), (0, 0), (1, 1), (1, 1)), mode='reflect')
    ih = jnp.arange(fh)[:, None] * ph + jnp.arange(kh)[None, :]        # (fh, kh)
    iw = jnp.arange(fw)[:, None] * pw + jnp.arange(kw)[None, :]        # (fw, kw)
    xp = xpad[:, :, ih[:, None, :, None], iw[None, :, None, :]]        # (b,C,fh,fw,kh,kw)
    xp = jnp.transpose(xp, (0, 2, 3, 1, 4, 5)).reshape(P, C, kh * kw)
    xp = jnp.pad(xp, ((0, P_pad - P), (0, 0), (0, M_in - kh * kw)))

    # ---- glue: split per-patch hyper-weight vector; fold eval-mode BN scales
    # into the weights (only the bias adds stay in-kernel).
    bn1s, bn1b, bn2s, bn2b, bn3s, bn3b = bn_params
    sflat = jnp.transpose(s, (0, 2, 3, 1)).reshape(P, hp)
    r1 = in_nc * hidden
    r2 = r1 + hidden * 9
    r3 = r2 + hidden * out_nc
    assert hp == r3
    w1 = sflat[:, :r1].reshape(P, hidden, in_nc) * bn1s.reshape(1, hidden, 1)
    w2 = sflat[:, r1:r2].reshape(P, hidden, 9) * bn2s.reshape(1, hidden, 1)
    w3 = sflat[:, r2:r3].reshape(P, out_nc, hidden) * bn3s.reshape(1, out_nc, 1)
    if P_pad > P:
        w1 = jnp.pad(w1, ((0, P_pad - P), (0, 0), (0, 0)))
        w2 = jnp.pad(w2, ((0, P_pad - P), (0, 0), (0, 0)))
        w3 = jnp.pad(w3, ((0, P_pad - P), (0, 0), (0, 0)))

    kernel = _make_kernel(C, hidden, out_nc, kw, M_in, M_out, use_res)
    out = pl.pallas_call(
        kernel,
        out_shape=jax.ShapeDtypeStruct((P_pad, out_nc, M_out), jnp.float32),
        grid_spec=pltpu.PrefetchScalarGridSpec(
            num_scalar_prefetch=0,
            grid=(P_pad // NP,),
            in_specs=[
                pl.BlockSpec((NP, C, M_in), lambda p: (p, 0, 0)),
                pl.BlockSpec((NP, hidden, in_nc), lambda p: (p, 0, 0)),
                pl.BlockSpec((NP, hidden, 9), lambda p: (p, 0, 0)),
                pl.BlockSpec((NP, out_nc, hidden), lambda p: (p, 0, 0)),
                # Biases: constant block index -> fetched once, stay resident.
                pl.BlockSpec((1, hidden), lambda p: (0, 0)),
                pl.BlockSpec((1, hidden), lambda p: (0, 0)),
                pl.BlockSpec((1, out_nc), lambda p: (0, 0)),
            ],
            out_specs=pl.BlockSpec((NP, out_nc, M_out), lambda p: (p, 0, 0)),
        ),
        compiler_params=pltpu.CompilerParams(
            dimension_semantics=("parallel",)),
    )(xp, w1, w2, w3, bn1b, bn2b, bn3b)

    # ---- glue: drop the kw-strided junk columns and stitch patches back to NCHW
    y = out[:P].reshape(b, fh, fw, out_nc, ph, kw)[..., :pw]
    y = jnp.transpose(y, (0, 3, 1, 4, 2, 5)).reshape(b, out_nc, H, W)
    return y


def _reference(x, s, bn_params, *, in_nc, out_nc, hidden, stride=1):
    """Pure-JAX reference of the same forward pass (eval-mode BN)."""
    b, C, H, W = x.shape
    hp, fh, fw = s.shape[1], s.shape[2], s.shape[3]
    ph, pw = H // fh, W // fw
    kh, kw = ph + 2, pw + 2
    P = b * fh * fw
    hi = jax.lax.Precision.HIGHEST

    xpad = jnp.pad(x, ((0, 0), (0, 0), (1, 1), (1, 1)), mode='reflect')
    ih = jnp.arange(fh)[:, None] * ph + jnp.arange(kh)[None, :]
    iw = jnp.arange(fw)[:, None] * pw + jnp.arange(kw)[None, :]
    xp = xpad[:, :, ih[:, None, :, None], iw[None, :, None, :]]
    xp = jnp.transpose(xp, (0, 2, 3, 4, 5, 1)).reshape(P, kh, kw, C)

    sflat = jnp.transpose(s, (0, 2, 3, 1)).reshape(P, hp)
    r1 = in_nc * hidden
    r2 = r1 + hidden * 9
    r3 = r2 + hidden * out_nc
    w1 = sflat[:, :r1].reshape(P, hidden, C)
    w2 = sflat[:, r1:r2].reshape(P, hidden, 3, 3)
    w3 = sflat[:, r2:r3].reshape(P, out_nc, hidden)
    bn1s, bn1b, bn2s, bn2b, bn3s, bn3b = bn_params

    h1 = jnp.einsum('pijc,phc->pijh', xp, w1, precision=hi)
    h1 = h1 * bn1s.reshape(1, 1, 1, hidden) + bn1b.reshape(1, 1, 1, hidden)
    h1 = jnp.clip(h1, 0.0, 6.0)

    h2 = jnp.zeros((P, ph, pw, hidden), jnp.float32)
    for di in range(3):
        for dj in range(3):
            h2 = h2 + w2[:, :, di, dj][:, None, None, :] * \
                h1[:, di:di + ph, dj:dj + pw, :]
    h2 = h2 * bn2s.reshape(1, 1, 1, hidden) + bn2b.reshape(1, 1, 1, hidden)
    h2 = jnp.clip(h2, 0.0, 6.0)

    y = jnp.einsum('pijh,poh->pijo', h2, w3, precision=hi)
    y = y * bn3s.reshape(1, 1, 1, out_nc) + bn3b.reshape(1, 1, 1, out_nc)

    if stride == 1 and in_nc == out_nc:
        xc = x.reshape(b, C, fh, ph, fw, pw)
        xc = jnp.transpose(xc, (0, 2, 4, 3, 5, 1)).reshape(P, ph, pw, C)
        y = y + xc

    y = y.reshape(b, fh, fw, ph, pw, out_nc)
    y = jnp.transpose(y, (0, 5, 1, 3, 2, 4)).reshape(b, out_nc, H, W)
    return y


if __name__ == "__main__":
    # Small shapes consistent with the module:
    #   in_nc = out_nc = 4, expand_ratio = 2 -> hidden = 8, stride = 1
    #   x: (2, 4, 16, 16) NCHW ; s: (2, hyper_params, 2, 2) with fh = fw = 2
    b, in_nc, out_nc, H, W = 2, 4, 4, 16, 16
    expand_ratio = 2
    hidden = int(round(in_nc * expand_ratio))
    fh = fw = 2
    hyper_params = in_nc * hidden + hidden * 3 * 3 + hidden * out_nc  # 136

    key = jax.random.PRNGKey(0)
    k1, k2 = jax.random.split(key)
    x = jax.random.normal(k1, (b, in_nc, H, W), dtype=jnp.float32)
    s = 0.3 * jax.random.normal(k2, (b, hyper_params, fh, fw), dtype=jnp.float32)

    # Deterministic eval-mode BatchNorm params (gamma, beta, running stats folded
    # into a per-channel scale/bias).
    def bn_affine(n, off):
        idx = jnp.arange(n, dtype=jnp.float32)
        gamma = 1.0 + 0.1 * (idx + off) / n
        beta = 0.05 * (idx - n / 2.0) / n
        mean = 0.02 * idx
        var = 1.0 + 0.05 * idx
        scale = gamma / jnp.sqrt(var + 1e-5)
        bias = beta - mean * scale
        return scale.reshape(1, n), bias.reshape(1, n)

    bn1s, bn1b = bn_affine(hidden, 0.0)
    bn2s, bn2b = bn_affine(hidden, 1.0)
    bn3s, bn3b = bn_affine(out_nc, 2.0)
    bn_params = (bn1s, bn1b, bn2s, bn2b, bn3s, bn3b)

    fwd = jax.jit(functools.partial(
        hyper_patch_inverted_residual,
        in_nc=in_nc, out_nc=out_nc, hidden=hidden, stride=1))
    y = jax.block_until_ready(fwd(x, s, bn_params))

    y_ref = jax.block_until_ready(_reference(
        x, s, bn_params, in_nc=in_nc, out_nc=out_nc, hidden=hidden, stride=1))

    assert y.shape == (b, out_nc, H, W)
    # All-f32 VPU pipeline (no MXU) -> tight tolerance.
    assert jnp.allclose(y, y_ref, rtol=1e-4, atol=1e-4), \
        float(jnp.max(jnp.abs(y - y_ref)))
    print("KERNEL_OK")
</pallas_src>

<mosaic_0001>
module attributes {stable_mosaic.version = 11 : i64} {
  func.func @kernel(%arg0: i32, %arg1: memref<8x4x102xf32, #tpu.memory_space<vmem>>, %arg2: memref<8x8x4xf32, #tpu.memory_space<vmem>>, %arg3: memref<8x8x9xf32, #tpu.memory_space<vmem>>, %arg4: memref<8x4x8xf32, #tpu.memory_space<vmem>>, %arg5: memref<1x8xf32, #tpu.memory_space<vmem>>, %arg6: memref<1x8xf32, #tpu.memory_space<vmem>>, %arg7: memref<1x4xf32, #tpu.memory_space<vmem>>, %arg8: memref<8x4x80xf32, #tpu.memory_space<vmem>>) attributes {dimension_semantics = [#tpu.dimension_semantics<parallel>], iteration_bounds = array<i64: 1>, scalar_prefetch = 0 : i64, scratch_operands = 0 : i64, tpu.core_type = #tpu.core_type<tc>, window_params = [{transform_indices = @transform_0, window_bounds = array<i64: 8, 4, 102>}, {transform_indices = @transform_1, window_bounds = array<i64: 8, 8, 4>}, {transform_indices = @transform_2, window_bounds = array<i64: 8, 8, 9>}, {transform_indices = @transform_3, window_bounds = array<i64: 8, 4, 8>}, {pipeline_mode = #tpu.pipeline_mode<synchronous>, transform_indices = @transform_4, window_bounds = array<i64: 1, 8>}, {pipeline_mode = #tpu.pipeline_mode<synchronous>, transform_indices = @transform_5, window_bounds = array<i64: 1, 8>}, {pipeline_mode = #tpu.pipeline_mode<synchronous>, transform_indices = @transform_6, window_bounds = array<i64: 1, 4>}, {transform_indices = @transform_7, window_bounds = array<i64: 8, 4, 80>}]} {
    %c0 = arith.constant 0 : index
    %c0_0 = arith.constant 0 : index
    %c0_1 = arith.constant 0 : index
    %0 = vector.load %arg1[%c0, %c0_0, %c0_1] : memref<8x4x102xf32, #tpu.memory_space<vmem>>, vector<8x4x102xf32>
    %c0_2 = arith.constant 0 : index
    %c0_3 = arith.constant 0 : index
    %c0_4 = arith.constant 0 : index
    %1 = vector.load %arg2[%c0_2, %c0_3, %c0_4] : memref<8x8x4xf32, #tpu.memory_space<vmem>>, vector<8x8x4xf32>
    %c0_5 = arith.constant 0 : index
    %c0_6 = arith.constant 0 : index
    %c0_7 = arith.constant 0 : index
    %2 = vector.load %arg3[%c0_5, %c0_6, %c0_7] : memref<8x8x9xf32, #tpu.memory_space<vmem>>, vector<8x8x9xf32>
    %c0_8 = arith.constant 0 : index
    %c0_9 = arith.constant 0 : index
    %c0_10 = arith.constant 0 : index
    %3 = vector.load %arg4[%c0_8, %c0_9, %c0_10] : memref<8x4x8xf32, #tpu.memory_space<vmem>>, vector<8x4x8xf32>
    %c0_11 = arith.constant 0 : index
    %c0_12 = arith.constant 0 : index
    %4 = vector.load %arg5[%c0_11, %c0_12] : memref<1x8xf32, #tpu.memory_space<vmem>>, vector<1x8xf32>
    %5 = vector.shape_cast %4 : vector<1x8xf32> to vector<1x8x1xf32>
    %c0_13 = arith.constant 0 : index
    %c0_14 = arith.constant 0 : index
    %6 = vector.load %arg6[%c0_13, %c0_14] : memref<1x8xf32, #tpu.memory_space<vmem>>, vector<1x8xf32>
    %7 = vector.shape_cast %6 : vector<1x8xf32> to vector<1x8x1xf32>
    %c0_15 = arith.constant 0 : index
    %c0_16 = arith.constant 0 : index
    %8 = vector.load %arg7[%c0_15, %c0_16] : memref<1x4xf32, #tpu.memory_space<vmem>>, vector<1x4xf32>
    %9 = vector.shape_cast %8 : vector<1x4xf32> to vector<1x4x1xf32>
    %10 = vector.extract_strided_slice %1 {offsets = [0, 0, 0], sizes = [8, 8, 1], strides = [1, 1, 1]} : vector<8x8x4xf32> to vector<8x8x1xf32>
    %11 = vector.extract_strided_slice %0 {offsets = [0, 0, 0], sizes = [8, 1, 102], strides = [1, 1, 1]} : vector<8x4x102xf32> to vector<8x1x102xf32>
    %12 = vector.broadcast %10 : vector<8x8x1xf32> to vector<8x8x102xf32>
    %13 = vector.broadcast %11 : vector<8x1x102xf32> to vector<8x8x102xf32>
    %14 = arith.mulf %12, %13 : vector<8x8x102xf32>
    %15 = vector.extract_strided_slice %1 {offsets = [0, 0, 1], sizes = [8, 8, 1], strides = [1, 1, 1]} : vector<8x8x4xf32> to vector<8x8x1xf32>
    %16 = vector.extract_strided_slice %0 {offsets = [0, 1, 0], sizes = [8, 1, 102], strides = [1, 1, 1]} : vector<8x4x102xf32> to vector<8x1x102xf32>
    %17 = vector.broadcast %15 : vector<8x8x1xf32> to vector<8x8x102xf32>
    %18 = vector.broadcast %16 : vector<8x1x102xf32> to vector<8x8x102xf32>
    %19 = arith.mulf %17, %18 : vector<8x8x102xf32>
    %20 = arith.addf %14, %19 : vector<8x8x102xf32>
    %21 = vector.extract_strided_slice %1 {offsets = [0, 0, 2], sizes = [8, 8, 1], strides = [1, 1, 1]} : vector<8x8x4xf32> to vector<8x8x1xf32>
    %22 = vector.extract_strided_slice %0 {offsets = [0, 2, 0], sizes = [8, 1, 102], strides = [1, 1, 1]} : vector<8x4x102xf32> to vector<8x1x102xf32>
    %23 = vector.broadcast %21 : vector<8x8x1xf32> to vector<8x8x102xf32>
    %24 = vector.broadcast %22 : vector<8x1x102xf32> to vector<8x8x102xf32>
    %25 = arith.mulf %23, %24 : vector<8x8x102xf32>
    %26 = arith.addf %20, %25 : vector<8x8x102xf32>
    %27 = vector.extract_strided_slice %1 {offsets = [0, 0, 3], sizes = [8, 8, 1], strides = [1, 1, 1]} : vector<8x8x4xf32> to vector<8x8x1xf32>
    %28 = vector.extract_strided_slice %0 {offsets = [0, 3, 0], sizes = [8, 1, 102], strides = [1, 1, 1]} : vector<8x4x102xf32> to vector<8x1x102xf32>
    %29 = vector.broadcast %27 : vector<8x8x1xf32> to vector<8x8x102xf32>
    %30 = vector.broadcast %28 : vector<8x1x102xf32> to vector<8x8x102xf32>
    %31 = arith.mulf %29, %30 : vector<8x8x102xf32>
    %32 = arith.addf %26, %31 : vector<8x8x102xf32>
    %33 = vector.broadcast %5 : vector<1x8x1xf32> to vector<8x8x102xf32>
    %34 = arith.addf %32, %33 : vector<8x8x102xf32>
    %cst = arith.constant 0.000000e+00 : f32
    %cst_17 = arith.constant 6.000000e+00 : f32
    %35 = vector.broadcast %cst : f32 to vector<8x8x102xf32>
    %36 = arith.maximumf %35, %34 : vector<8x8x102xf32>
    %37 = vector.broadcast %cst_17 : f32 to vector<8x8x102xf32>
    %38 = arith.minimumf %37, %36 : vector<8x8x102xf32>
    %39 = vector.extract_strided_slice %2 {offsets = [0, 0, 0], sizes = [8, 8, 1], strides = [1, 1, 1]} : vector<8x8x9xf32> to vector<8x8x1xf32>
    %40 = vector.extract_strided_slice %38 {offsets = [0, 0, 0], sizes = [8, 8, 80], strides = [1, 1, 1]} : vector<8x8x102xf32> to vector<8x8x80xf32>
    %41 = vector.broadcast %39 : vector<8x8x1xf32> to vector<8x8x80xf32>
    %42 = arith.mulf %41, %40 : vector<8x8x80xf32>
    %43 = vector.extract_strided_slice %2 {offsets = [0, 0, 1], sizes = [8, 8, 1], strides = [1, 1, 1]} : vector<8x8x9xf32> to vector<8x8x1xf32>
    %44 = vector.extract_strided_slice %38 {offsets = [0, 0, 1], sizes = [8, 8, 80], strides = [1, 1, 1]} : vector<8x8x102xf32> to vector<8x8x80xf32>
    %45 = vector.broadcast %43 : vector<8x8x1xf32> to vector<8x8x80xf32>
    %46 = arith.mulf %45, %44 : vector<8x8x80xf32>
    %47 = arith.addf %42, %46 : vector<8x8x80xf32>
    %48 = vector.extract_strided_slice %2 {offsets = [0, 0, 2], sizes = [8, 8, 1], strides = [1, 1, 1]} : vector<8x8x9xf32> to vector<8x8x1xf32>
    %49 = vector.extract_strided_slice %38 {offsets = [0, 0, 2], sizes = [8, 8, 80], strides = [1, 1, 1]} : vector<8x8x102xf32> to vector<8x8x80xf32>
    %50 = vector.broadcast %48 : vector<8x8x1xf32> to vector<8x8x80xf32>
    %51 = arith.mulf %50, %49 : vector<8x8x80xf32>
    %52 = arith.addf %47, %51 : vector<8x8x80xf32>
    %53 = vector.extract_strided_slice %2 {offsets = [0, 0, 3], sizes = [8, 8, 1], strides = [1, 1, 1]} : vector<8x8x9xf32> to vector<8x8x1xf32>
    %54 = vector.extract_strided_slice %38 {offsets = [0, 0, 10], sizes = [8, 8, 80], strides = [1, 1, 1]} : vector<8x8x102xf32> to vector<8x8x80xf32>
    %55 = vector.broadcast %53 : vector<8x8x1xf32> to vector<8x8x80xf32>
    %56 = arith.mulf %55, %54 : vector<8x8x80xf32>
    %57 = arith.addf %52, %56 : vector<8x8x80xf32>
    %58 = vector.extract_strided_slice %2 {offsets = [0, 0, 4], sizes = [8, 8, 1], strides = [1, 1, 1]} : vector<8x8x9xf32> to vector<8x8x1xf32>
    %59 = vector.extract_strided_slice %38 {offsets = [0, 0, 11], sizes = [8, 8, 80], strides = [1, 1, 1]} : vector<8x8x102xf32> to vector<8x8x80xf32>
    %60 = vector.broadcast %58 : vector<8x8x1xf32> to vector<8x8x80xf32>
    %61 = arith.mulf %60, %59 : vector<8x8x80xf32>
    %62 = arith.addf %57, %61 : vector<8x8x80xf32>
    %63 = vector.extract_strided_slice %2 {offsets = [0, 0, 5], sizes = [8, 8, 1], strides = [1, 1, 1]} : vector<8x8x9xf32> to vector<8x8x1xf32>
    %64 = vector.extract_strided_slice %38 {offsets = [0, 0, 12], sizes = [8, 8, 80], strides = [1, 1, 1]} : vector<8x8x102xf32> to vector<8x8x80xf32>
    %65 = vector.broadcast %63 : vector<8x8x1xf32> to vector<8x8x80xf32>
    %66 = arith.mulf %65, %64 : vector<8x8x80xf32>
    %67 = arith.addf %62, %66 : vector<8x8x80xf32>
    %68 = vector.extract_strided_slice %2 {offsets = [0, 0, 6], sizes = [8, 8, 1], strides = [1, 1, 1]} : vector<8x8x9xf32> to vector<8x8x1xf32>
    %69 = vector.extract_strided_slice %38 {offsets = [0, 0, 20], sizes = [8, 8, 80], strides = [1, 1, 1]} : vector<8x8x102xf32> to vector<8x8x80xf32>
    %70 = vector.broadcast %68 : vector<8x8x1xf32> to vector<8x8x80xf32>
    %71 = arith.mulf %70, %69 : vector<8x8x80xf32>
    %72 = arith.addf %67, %71 : vector<8x8x80xf32>
    %73 = vector.extract_strided_slice %2 {offsets = [0, 0, 7], sizes = [8, 8, 1], strides = [1, 1, 1]} : vector<8x8x9xf32> to vector<8x8x1xf32>
    %74 = vector.extract_strided_slice %38 {offsets = [0, 0, 21], sizes = [8, 8, 80], strides = [1, 1, 1]} : vector<8x8x102xf32> to vector<8x8x80xf32>
    %75 = vector.broadcast %73 : vector<8x8x1xf32> to vector<8x8x80xf32>
    %76 = arith.mulf %75, %74 : vector<8x8x80xf32>
    %77 = arith.addf %72, %76 : vector<8x8x80xf32>
    %78 = vector.extract_strided_slice %2 {offsets = [0, 0, 8], sizes = [8, 8, 1], strides = [1, 1, 1]} : vector<8x8x9xf32> to vector<8x8x1xf32>
    %79 = vector.extract_strided_slice %38 {offsets = [0, 0, 22], sizes = [8, 8, 80], strides = [1, 1, 1]} : vector<8x8x102xf32> to vector<8x8x80xf32>
    %80 = vector.broadcast %78 : vector<8x8x1xf32> to vector<8x8x80xf32>
    %81 = arith.mulf %80, %79 : vector<8x8x80xf32>
    %82 = arith.addf %77, %81 : vector<8x8x80xf32>
    %83 = vector.broadcast %7 : vector<1x8x1xf32> to vector<8x8x80xf32>
    %84 = arith.addf %82, %83 : vector<8x8x80xf32>
    %cst_18 = arith.constant 0.000000e+00 : f32
    %cst_19 = arith.constant 6.000000e+00 : f32
    %85 = vector.broadcast %cst_18 : f32 to vector<8x8x80xf32>
    %86 = arith.maximumf %85, %84 : vector<8x8x80xf32>
    %87 = vector.broadcast %cst_19 : f32 to vector<8x8x80xf32>
    %88 = arith.minimumf %87, %86 : vector<8x8x80xf32>
    %89 = vector.extract_strided_slice %3 {offsets = [0, 0, 0], sizes = [8, 4, 1], strides = [1, 1, 1]} : vector<8x4x8xf32> to vector<8x4x1xf32>
    %90 = vector.extract_strided_slice %88 {offsets = [0, 0, 0], sizes = [8, 1, 80], strides = [1, 1, 1]} : vector<8x8x80xf32> to vector<8x1x80xf32>
    %91 = vector.broadcast %89 : vector<8x4x1xf32> to vector<8x4x80xf32>
    %92 = vector.broadcast %90 : vector<8x1x80xf32> to vector<8x4x80xf32>
    %93 = arith.mulf %91, %92 : vector<8x4x80xf32>
    %94 = vector.extract_strided_slice %3 {offsets = [0, 0, 1], sizes = [8, 4, 1], strides = [1, 1, 1]} : vector<8x4x8xf32> to vector<8x4x1xf32>
    %95 = vector.extract_strided_slice %88 {offsets = [0, 1, 0], sizes = [8, 1, 80], strides = [1, 1, 1]} : vector<8x8x80xf32> to vector<8x1x80xf32>
    %96 = vector.broadcast %94 : vector<8x4x1xf32> to vector<8x4x80xf32>
    %97 = vector.broadcast %95 : vector<8x1x80xf32> to vector<8x4x80xf32>
    %98 = arith.mulf %96, %97 : vector<8x4x80xf32>
    %99 = arith.addf %93, %98 : vector<8x4x80xf32>
    %100 = vector.extract_strided_slice %3 {offsets = [0, 0, 2], sizes = [8, 4, 1], strides = [1, 1, 1]} : vector<8x4x8xf32> to vector<8x4x1xf32>
    %101 = vector.extract_strided_slice %88 {offsets = [0, 2, 0], sizes = [8, 1, 80], strides = [1, 1, 1]} : vector<8x8x80xf32> to vector<8x1x80xf32>
    %102 = vector.broadcast %100 : vector<8x4x1xf32> to vector<8x4x80xf32>
    %103 = vector.broadcast %101 : vector<8x1x80xf32> to vector<8x4x80xf32>
    %104 = arith.mulf %102, %103 : vector<8x4x80xf32>
    %105 = arith.addf %99, %104 : vector<8x4x80xf32>
    %106 = vector.extract_strided_slice %3 {offsets = [0, 0, 3], sizes = [8, 4, 1], strides = [1, 1, 1]} : vector<8x4x8xf32> to vector<8x4x1xf32>
    %107 = vector.extract_strided_slice %88 {offsets = [0, 3, 0], sizes = [8, 1, 80], strides = [1, 1, 1]} : vector<8x8x80xf32> to vector<8x1x80xf32>
    %108 = vector.broadcast %106 : vector<8x4x1xf32> to vector<8x4x80xf32>
    %109 = vector.broadcast %107 : vector<8x1x80xf32> to vector<8x4x80xf32>
    %110 = arith.mulf %108, %109 : vector<8x4x80xf32>
    %111 = arith.addf %105, %110 : vector<8x4x80xf32>
    %112 = vector.extract_strided_slice %3 {offsets = [0, 0, 4], sizes = [8, 4, 1], strides = [1, 1, 1]} : vector<8x4x8xf32> to vector<8x4x1xf32>
    %113 = vector.extract_strided_slice %88 {offsets = [0, 4, 0], sizes = [8, 1, 80], strides = [1, 1, 1]} : vector<8x8x80xf32> to vector<8x1x80xf32>
    %114 = vector.broadcast %112 : vector<8x4x1xf32> to vector<8x4x80xf32>
    %115 = vector.broadcast %113 : vector<8x1x80xf32> to vector<8x4x80xf32>
    %116 = arith.mulf %114, %115 : vector<8x4x80xf32>
    %117 = arith.addf %111, %116 : vector<8x4x80xf32>
    %118 = vector.extract_strided_slice %3 {offsets = [0, 0, 5], sizes = [8, 4, 1], strides = [1, 1, 1]} : vector<8x4x8xf32> to vector<8x4x1xf32>
    %119 = vector.extract_strided_slice %88 {offsets = [0, 5, 0], sizes = [8, 1, 80], strides = [1, 1, 1]} : vector<8x8x80xf32> to vector<8x1x80xf32>
    %120 = vector.broadcast %118 : vector<8x4x1xf32> to vector<8x4x80xf32>
    %121 = vector.broadcast %119 : vector<8x1x80xf32> to vector<8x4x80xf32>
    %122 = arith.mulf %120, %121 : vector<8x4x80xf32>
    %123 = arith.addf %117, %122 : vector<8x4x80xf32>
    %124 = vector.extract_strided_slice %3 {offsets = [0, 0, 6], sizes = [8, 4, 1], strides = [1, 1, 1]} : vector<8x4x8xf32> to vector<8x4x1xf32>
    %125 = vector.extract_strided_slice %88 {offsets = [0, 6, 0], sizes = [8, 1, 80], strides = [1, 1, 1]} : vector<8x8x80xf32> to vector<8x1x80xf32>
    %126 = vector.broadcast %124 : vector<8x4x1xf32> to vector<8x4x80xf32>
    %127 = vector.broadcast %125 : vector<8x1x80xf32> to vector<8x4x80xf32>
    %128 = arith.mulf %126, %127 : vector<8x4x80xf32>
    %129 = arith.addf %123, %128 : vector<8x4x80xf32>
    %130 = vector.extract_strided_slice %3 {offsets = [0, 0, 7], sizes = [8, 4, 1], strides = [1, 1, 1]} : vector<8x4x8xf32> to vector<8x4x1xf32>
    %131 = vector.extract_strided_slice %88 {offsets = [0, 7, 0], sizes = [8, 1, 80], strides = [1, 1, 1]} : vector<8x8x80xf32> to vector<8x1x80xf32>
    %132 = vector.broadcast %130 : vector<8x4x1xf32> to vector<8x4x80xf32>
    %133 = vector.broadcast %131 : vector<8x1x80xf32> to vector<8x4x80xf32>
    %134 = arith.mulf %132, %133 : vector<8x4x80xf32>
    %135 = arith.addf %129, %134 : vector<8x4x80xf32>
    %136 = vector.broadcast %9 : vector<1x4x1xf32> to vector<8x4x80xf32>
    %137 = arith.addf %135, %136 : vector<8x4x80xf32>
    %138 = vector.extract_strided_slice %0 {offsets = [0, 0, 11], sizes = [8, 4, 80], strides = [1, 1, 1]} : vector<8x4x102xf32> to vector<8x4x80xf32>
    %139 = arith.addf %137, %138 : vector<8x4x80xf32>
    %c0_20 = arith.constant 0 : index
    %c0_21 = arith.constant 0 : index
    %c0_22 = arith.constant 0 : index
    %140 = vector.load %arg8[%c0_20, %c0_21, %c0_22] : memref<8x4x80xf32, #tpu.memory_space<vmem>>, vector<8x4x80xf32>
    tpu.vector_store %arg8[%c0_20, %c0_21, %c0_22], %139 {strides = array<i32>} : memref<8x4x80xf32, #tpu.memory_space<vmem>>, vector<8x4x80xf32>,
    return
  }
  func.func @transform_0(%arg0: i32) -> (i32, i32, i32) {
    %c0_i32 = arith.constant 0 : i32
    %c0_i32_0 = arith.constant 0 : i32
    %c0_i32_1 = arith.constant 0 : i32
    return %arg0, %c0_i32, %c0_i32_0 : i32, i32, i32
  }
  func.func @transform_1(%arg0: i32) -> (i32, i32, i32) {
    %c0_i32 = arith.constant 0 : i32
    %c0_i32_0 = arith.constant 0 : i32
    %c0_i32_1 = arith.constant 0 : i32
    return %arg0, %c0_i32, %c0_i32_0 : i32, i32, i32
  }
  func.func @transform_2(%arg0: i32) -> (i32, i32, i32) {
    %c0_i32 = arith.constant 0 : i32
    %c0_i32_0 = arith.constant 0 : i32
    %c0_i32_1 = arith.constant 0 : i32
    return %arg0, %c0_i32, %c0_i32_0 : i32, i32, i32
  }
  func.func @transform_3(%arg0: i32) -> (i32, i32, i32) {
    %c0_i32 = arith.constant 0 : i32
    %c0_i32_0 = arith.constant 0 : i32
    %c0_i32_1 = arith.constant 0 : i32
    return %arg0, %c0_i32, %c0_i32_0 : i32, i32, i32
  }
  func.func @transform_4(%arg0: i32) -> (i32, i32) {
    %c0_i32 = arith.constant 0 : i32
    %c0_i32_0 = arith.constant 0 : i32
    %c0_i32_1 = arith.constant 0 : i32
    return %c0_i32, %c0_i32_0 : i32, i32
  }
  func.func @transform_5(%arg0: i32) -> (i32, i32) {
    %c0_i32 = arith.constant 0 : i32
    %c0_i32_0 = arith.constant 0 : i32
    %c0_i32_1 = arith.constant 0 : i32
    return %c0_i32, %c0_i32_0 : i32, i32
  }
  func.func @transform_6(%arg0: i32) -> (i32, i32) {
    %c0_i32 = arith.constant 0 : i32
    %c0_i32_0 = arith.constant 0 : i32
    %c0_i32_1 = arith.constant 0 : i32
    return %c0_i32, %c0_i32_0 : i32, i32
  }
  func.func @transform_7(%arg0: i32) -> (i32, i32, i32) {
    %c0_i32 = arith.constant 0 : i32
    %c0_i32_0 = arith.constant 0 : i32
    %c0_i32_1 = arith.constant 0 : i32
    return %arg0, %c0_i32, %c0_i32_0 : i32, i32, i32
  }
}

</mosaic_0001>

<bundles_post_ra>
// kernel: hyper_patch_inverted_residual.1
= control target key start
LH: loop header
LB: loop body
LE: loop exit
PB: predicated region body
PF: predicated region fallthrough
CT: control target
= control target key end

     0   :  { %v3060_v2 = vmov 0   ;;  %v3058_v12 = vmov 1   ;;  %v3056_v15 = vmov 2   ;;  %v3062_v18 = vmov 3   ;;  %s1909_s23 = smov 127   ;;  %s1910_s24 = smov 126   ;;  %s3048_s6 = inlined_call_operand.vmem [shape: f32[1,4], index: 6, kind: input, shape index: {}]   ;;  %s3049_s4 = inlined_call_operand.vmem [shape: f32[1,8], index: 4, kind: input, shape index: {}]   ;;  %s3050_s5 = inlined_call_operand.vmem [shape: f32[1,8], index: 5, kind: input, shape index: {}]   ;;  %s3051_s1 = inlined_call_operand.vmem [shape: f32[8,8,4], index: 1, kind: input, shape index: {}]   ;;  %s3052_s2 = inlined_call_operand.vmem [shape: f32[8,8,9], index: 2, kind: input, shape index: {}]   ;;  %s3053_s0 = inlined_call_operand.vmem [shape: f32[8,4,102], index: 0, kind: input, shape index: {}]   ;;  %s3054_s3 = inlined_call_operand.vmem [shape: f32[8,4,8], index: 3, kind: input, shape index: {}]   ;;  %s3055_s7 = inlined_call_operand.vmem [shape: f32[8,4,80], index: 7, kind: output, shape index: {}]  }
   0x1   :  { %v1841_v0 = vld [vmem:[%s3048_s6] ss:$0 sm:$0xff]  ;;  %1859 = vset.pattern.permute.xlu1 %v3060_v2  ;;  %1860 = vset.pattern.permute.xlu0 %v3060_v2  ;;  %v35_v5 = vld [vmem:[%s3051_s1 + $0x8] sm:$0xff]  ;;  %v36_v6 = vld [vmem:[%s3051_s1 + $0x10] sm:$0xff]  ;;  %v122_v53 = vlaneseq  ;;  %s1912_s25 = smov 118   ;;  %s1914_s26 = smov 117  }
   0x2   :  { %v1839_v1 = vld [vmem:[%s3049_s4] ss:$0 sm:$0xff]  ;;  %80 = vbcast.lane.b32.xlu1 %v1841_v0, 256  ;;  %v37_v8 = vld [vmem:[%s3051_s1 + $0x18] sm:$0xff]  ;;  %v40_v9 = vld [vmem:[%s3051_s1 + $0x30] sm:$0xff]  ;;  %s1916_s27 = smov 116  }
   0x3   :  { %64 = vbcast.lane.b32.xlu0 %v1839_v1, 256  ;;  %v1840_v3 = vld [vmem:[%s3050_s5] ss:$0 sm:$0xff]  ;;  %v39_v10 = vld [vmem:[%s3051_s1 + $0x28] sm:$0xff]  ;;  %v41_v11 = vld [vmem:[%s3051_s1 + $0x38] sm:$0xff]  ;;  %v2126_v56 = vshrl.u32 %v122_v53, 7 }
   0x4   :  { %v34_v4 = vld [vmem:[%s3051_s1] sm:$0xff]  ;;  %v2008_v14 = vld [vmem:[%s3052_s2 + $0x18] sm:$0xff]  ;;  %v2015_v16 = vld [vmem:[%s3052_s2 + $0x28] sm:$0xff]  ;;  %s1918_s28 = smov 108   ;;  %s1920_s29 = smov 107   ;;  %vm1826_vm0 = vcmask 650240  }
   0x5   :  { %v38_v7 = vld [vmem:[%s3051_s1 + $0x20] sm:$0xff]  ;;  %3101 = vst [vmem:[#allocation3_spill] sm:$0xff] %v2008_v14  ;;  %3102 = vst [vmem:[#allocation4_spill] sm:$0xff] %v2015_v16  ;;  %v2021_v17 = vld [vmem:[%s3052_s2 + $0x38] sm:$0xff]  ;;  %v2129_v57 = vsub.s32 1, %v2126_v56  ;;  %v2136_v60 = vsub.s32 0, %v2126_v56 }
   0x6   :  { %84 = vperm.xlu1 %1859, %v34_v4   ;;  %v2002_v13 = vld [vmem:[%s3052_s2] sm:$0xff]  ;;  %3103 = vst [vmem:[#allocation5_spill] sm:$0xff] %v2021_v17  ;;  %v2029_v19 = vld [vmem:[%s3052_s2 + $0x8] sm:$0xff]  ;;  %v2041_v21 = vld [vmem:[%s3052_s2 + $0x30] sm:$0xff]  ;;  %v2139_v61 = vsub.s32 2, %v2126_v56  ;;  %s1921_s30 = smov 106  }
   0x7   :  { %72 = vbcast.lane.b32.xlu0 %v1840_v3, 256  ;;  %3100 = vst [vmem:[#allocation2_spill] sm:$0xff] %v2002_v13  ;;  %3104 = vst [vmem:[#allocation6_spill] sm:$0xff] %v2029_v19  ;;  %v2035_v20 = vld [vmem:[%s3052_s2 + $0x20] sm:$0xff]  ;;  %v2050_v22 = vld [vmem:[%s3052_s2 + $0x10] sm:$0xff] }
   0x8   :  { %3105 = vst [vmem:[#allocation7_spill] sm:$0xff] %v2035_v20  ;;  %3106 = vst [vmem:[#allocation8_spill] sm:$0xff] %v2041_v21  ;;  %v26_v62 = vld [vmem:[%s3053_s0] sm:$0xf]  ;;  %v2147_v63 = vld [vmem:[%s3053_s0 + $0x8] sm:$0xf] }
   0x9   :  { %3107 = vst [vmem:[#allocation9_spill] sm:$0xff] %v2050_v22  ;;  %3115 = vst [vmem:[#allocation17_spill] sm:$0xff] %v2126_v56  ;;  %v27_v0 = vld [vmem:[%s3053_s0 + $0x4] sm:$0xf]  ;;  %v197_v1 = vrot.slane %v26_v62, %v2129_v57  ;;  %v133_v53 = vrot.slane %v2147_v63, %v2136_v60 }
   0xa   :  { %94 = vperm.xlu1 %1859, %v36_v6   ;;  %3116 = vst [vmem:[#allocation18_spill] sm:$0xff] %v2129_v57  ;;  %3118 = vst [vmem:[#allocation20_spill] sm:$0xff] %v2136_v60 }
   0xb   :  { %89 = vperm.xlu0 %1860, %v35_v5   ;;  %3119 = vst [vmem:[#allocation21_spill] sm:$0xff] %v2139_v61 }
   0xe   :  { %99 = vperm.xlu1 %1859, %v37_v8  }
   0xf   :  { %104 = vperm.xlu0 %1860, %v38_v7  }
  0x12   :  { %109 = vperm.xlu1 %1859, %v39_v10  }
  0x13   :  { %114 = vperm.xlu0 %1860, %v40_v9  }
  0x16   :  { %119 = vperm.xlu1 %1859, %v41_v11  }
  0x17   :  { %1861 = vset.pattern.permute.xlu0 %v3058_v12 }
  0x18   :  { %163 = vperm.xlu0 %1861, %v34_v4  }
  0x1a   :  { %1862 = vset.pattern.permute.xlu1 %v3058_v12 }
  0x1b   :  { %167 = vperm.xlu1 %1862, %v35_v5  }
  0x1c   :  { %175 = vperm.xlu0 %1861, %v37_v8  }
  0x1f   :  { %171 = vperm.xlu1 %1862, %v36_v6  }
  0x20   :  { %183 = vperm.xlu0 %1861, %v39_v10  }
  0x23   :  { %179 = vperm.xlu1 %1862, %v38_v7  }
  0x24   :  { %191 = vperm.xlu0 %1861, %v41_v11  }
  0x27   :  { %187 = vperm.xlu1 %1862, %v40_v9  }
  0x28   :  { %475 = vperm.xlu0 %1861, %v2002_v13  }
  0x2b   :  { %1863 = vset.pattern.permute.xlu1 %v3056_v15 }
  0x2c   :  { %487 = vperm.xlu0 %1861, %v2008_v14   ;;  %243 = vperm.xlu1 %1863, %v34_v4  }
  0x30   :  { %495 = vperm.xlu0 %1861, %v2015_v16   ;;  %251 = vperm.xlu1 %1863, %v36_v6  }
  0x34   :  { %503 = vperm.xlu0 %1861, %v2021_v17   ;;  %255 = vperm.xlu1 %1863, %v37_v8  }
  0x38   :  { %1867 = vset.pattern.permute.xlu0 %v3056_v15  ;;  %263 = vperm.xlu1 %1863, %v39_v10  }
  0x39   :  { %247 = vperm.xlu0 %1867, %v35_v5  }
  0x3c   :  { %271 = vperm.xlu1 %1863, %v41_v11  }
  0x3d   :  { %259 = vperm.xlu0 %1867, %v38_v7  }
  0x40   :  { %1864 = vset.pattern.permute.xlu1 %v3062_v18 }
  0x41   :  { %267 = vperm.xlu0 %1867, %v40_v9   ;;  %327 = vperm.xlu1 %1864, %v35_v5   ;;  %v2163_v5 = vld [vmem:[%s3053_s0 + $0x10] sm:$0xf] }
  0x45   :  { %559 = vperm.xlu0 %1867, %v2029_v19   ;;  %331 = vperm.xlu1 %1864, %v36_v6  }
  0x49   :  { %571 = vperm.xlu0 %1867, %v2035_v20   ;;  %339 = vperm.xlu1 %1864, %v38_v7   ;;  %v125_v7 = vrot.slane %v26_v62, %v2136_v60 }
  0x4d   :  { %579 = vperm.xlu0 %1867, %v2041_v21   ;;  %347 = vperm.xlu1 %1864, %v40_v9   ;;  %v2176_v9 = vld [vmem:[%s3053_s0 + $0x18] sm:$0xf] }
  0x51   :  { %1869 = vset.pattern.permute.xlu0 %v3062_v18  ;;  %1865 = vset.pattern.permute.xlu1 %v3060_v2 }
  0x52   :  { %323 = vperm.xlu0 %1869, %v34_v4   ;;  %428 = vperm.xlu1 %1865, %v2002_v13   ;;  %v2158_v4 = vld [vmem:[%s3053_s0 + $0xc] sm:$0xf] }
  0x56   :  { %335 = vperm.xlu0 %1869, %v37_v8   ;;  %438 = vperm.xlu1 %1865, %v2050_v22   ;;  %v2171_v8 = vld [vmem:[%s3053_s0 + $0x14] sm:$0xf] }
  0x5a   :  { %343 = vperm.xlu0 %1869, %v39_v10   ;;  %443 = vperm.xlu1 %1865, %v2008_v14   ;;  %v2181_v10 = vld [vmem:[%s3053_s0 + $0x1c] sm:$0xf] }
  0x5e   :  { %351 = vperm.xlu0 %1869, %v41_v11   ;;  %453 = vperm.xlu1 %1865, %v2015_v16   ;;  %v277_v11 = vrot.slane %v26_v62, %v2139_v61 }
  0x62   :  { %463 = vperm.xlu1 %1865, %v2021_v17  }
  0x66   :  { %1866 = vset.pattern.permute.xlu1 %v3058_v12  ;;  %v137_v12 = vrot.slane %v2158_v4, %v2136_v60 }
  0x67   :  { %479 = vperm.xlu1 %1866, %v2029_v19   ;;  %v209_v19 = vrot.slane %v2158_v4, %v2129_v57 }
  0x6b   :  { %483 = vperm.xlu1 %1866, %v2050_v22  }
  0x6f   :  { %491 = vperm.xlu1 %1866, %v2035_v20   ;;  %v205_v20 = vrot.slane %v2147_v63, %v2129_v57 }
  0x73   :  { %499 = vperm.xlu1 %1866, %v2041_v21   ;;  %v145_v21 = vrot.slane %v2171_v8, %v2136_v60 }
  0x74   :  { %v2066_v24 = vpop.permute.xlu1 %80 }
  0x75   :  { %v2063_v23 = vpop.permute.xlu0 %64  ;;  %3108 = vst [vmem:[#allocation10_spill] sm:$0xff] %v2066_v24  ;;  %v2192_v24 = vsub.s32 3, %v2126_v56 }
  0x77   :  { %1868 = vset.pattern.permute.xlu1 %v3056_v15  ;;  %v129_v15 = vrot.slane %v27_v0, %v2136_v60  ;;  %3122 = vst [vmem:[#allocation24_spill] sm:$0xff] %v2192_v24  ;;  %v357_v56 = vrot.slane %v26_v62, %v2192_v24  ;;  %v281_v62 = vrot.slane %v27_v0, %v2139_v61 }
  0x78   :  { %555 = vperm.xlu1 %1868, %v2002_v13   ;;  %v213_v13 = vrot.slane %v2163_v5, %v2129_v57  ;;  %v361_v17 = vrot.slane %v27_v0, %v2192_v24 }
  0x79   :  { %v2068_v25 = vpop.permute.xlu0 %72 }
  0x7a   :  { %3109 = vst [vmem:[#allocation11_spill] sm:$0xff] %v2068_v25 }
  0x7c   :  { %563 = vperm.xlu1 %1868, %v2050_v22   ;;  %v225_v22 = vrot.slane %v2181_v10, %v2129_v57 }
  0x80   :  { %567 = vperm.xlu1 %1868, %v2008_v14   ;;  %v217_v14 = vrot.slane %v2171_v8, %v2129_v57 }
  0x81   :  { %v2071_v26 = vpop.permute.xlu1 %84 }
  0x84   :  { %575 = vperm.xlu1 %1868, %v2015_v16  }
  0x85   :  { %v2074_v27 = vpop.permute.xlu1 %94 }
  0x86   :  { %v2076_v28 = vpop.permute.xlu0 %89 }
  0x89   :  { %v2078_v29 = vpop.permute.xlu1 %99 }
  0x8a   :  { %v2080_v30 = vpop.permute.xlu0 %104 }
  0x8d   :  { %v2082_v31 = vpop.permute.xlu1 %109 }
  0x8e   :  { %v2084_v32 = vpop.permute.xlu0 %114 }
  0x8f   :  { %3110 = vst [vmem:[#allocation12_spill] sm:$0xff] %v2084_v32  ;;  %v373_v32 = vrot.slane %v2163_v5, %v2192_v24 }
  0x91   :  { %v2086_v33 = vpop.permute.xlu1 %119 }
  0x93   :  { %v164_v34 = vpop.permute.xlu0 %163 }
  0x94   :  { %v226_v18 = vmul.f32 %v197_v1, %v164_v34  ;;  %v154_v34 = vmul.f32 %v125_v7, %v2071_v26  ;;  %v201_v1 = vrot.slane %v27_v0, %v2129_v57  ;;  %v221_v26 = vrot.slane %v2176_v9, %v2129_v57 }
  0x95   :  { %v289_v7 = vrot.slane %v2158_v4, %v2139_v61 }
  0x96   :  { %v2090_v36 = vpop.permute.xlu1 %167 }
  0x97   :  { %v2088_v35 = vpop.permute.xlu0 %175  ;;  %v227_v57 = vmul.f32 %v201_v1, %v2090_v36  ;;  %v369_v36 = vrot.slane %v2158_v4, %v2192_v24 }
  0x9a   :  { %v2094_v38 = vpop.permute.xlu1 %171 }
  0x9b   :  { %v2092_v37 = vpop.permute.xlu0 %183 }
  0x9e   :  { %v2098_v40 = vpop.permute.xlu1 %179 }
  0x9f   :  { %v2096_v39 = vpop.permute.xlu0 %191  ;;  %v230_v4 = vmul.f32 %v213_v13, %v2098_v40 }
  0xa2   :  { %v2102_v42 = vpop.permute.xlu1 %187 }
  0xa3   :  { %v2100_v41 = vpop.permute.xlu0 %475 }
  0xa7   :  { %v2104_v43 = vpop.permute.xlu0 %487  ;;  %v244_v44 = vpop.permute.xlu1 %243 }
  0xa8   :  { %3111 = vst [vmem:[#allocation13_spill] sm:$0xff] %v2104_v43  ;;  %v306_v2 = vmul.f32 %v277_v11, %v244_v44  ;;  %v285_v44 = vrot.slane %v2147_v63, %v2139_v61  ;;  %v297_v11 = vrot.slane %v2171_v8, %v2139_v61  ;;  %v229_v43 = vmul.f32 %v209_v19, %v2088_v35 }
  0xa9   :  { %v228_v19 = vmul.f32 %v205_v20, %v2094_v38  ;;  %v231_v20 = vmul.f32 %v217_v14, %v2092_v37  ;;  %v385_v38 = vrot.slane %v2181_v10, %v2192_v24 }
  0xab   :  { %v2106_v45 = vpop.permute.xlu0 %495  ;;  %v2108_v46 = vpop.permute.xlu1 %251 }
  0xac   :  { %3112 = vst [vmem:[#allocation14_spill] sm:$0xff] %v2106_v45 }
  0xaf   :  { %v2110_v47 = vpop.permute.xlu0 %503  ;;  %v2112_v48 = vpop.permute.xlu1 %255 }
  0xb0   :  { %3113 = vst [vmem:[#allocation15_spill] sm:$0xff] %v2110_v47  ;;  %v309_v35 = vmul.f32 %v289_v7, %v2112_v48  ;;  %v308_v48 = vmul.f32 %v285_v44, %v2108_v46  ;;  %v3125_v46 = vrot.slane %v2163_v5, %v2136_v60 }
  0xb2   :  { %v158_v44 = vmul.f32 %v3125_v46, %v2080_v30 }
  0xb3   :  { %v2116_v50 = vpop.permute.xlu1 %263 }
  0xb4   :  { %v2114_v49 = vpop.permute.xlu0 %247 }
  0xb7   :  { %v2120_v52 = vpop.permute.xlu1 %271 }
  0xb8   :  { %v2118_v51 = vpop.permute.xlu0 %259 }
  0xbc   :  { %v2122_v54 = vpop.permute.xlu0 %267  ;;  %v2124_v55 = vpop.permute.xlu1 %327 }
  0xbd   :  { %3114 = vst [vmem:[#allocation16_spill] sm:$0xff] %v2122_v54  ;;  %v365_v54 = vrot.slane %v2147_v63, %v2192_v24  ;;  %v381_v63 = vrot.slane %v2176_v9, %v2192_v24 }
  0xc0   :  { %v2131_v58 = vpop.permute.xlu0 %559  ;;  %v2133_v59 = vpop.permute.xlu1 %331 }
  0xc1   :  { %3117 = vst [vmem:[#allocation19_spill] sm:$0xff] %v2131_v58  ;;  %v388_v14 = vmul.f32 %v365_v54, %v2133_v59  ;;  %v3126_v59 = vrot.slane %v2181_v10, %v2136_v60 }
  0xc3   :  { %v161_v7 = vmul.f32 %v3126_v59, %v2086_v33  ;;  %v3129_v33 = vrot.slane %v2176_v9, %v2136_v60  ;;  %v3133_v59 = vld [vmem:[#allocation14_spill] sm:$0xff] }
  0xc4   :  { %v2153_v3 = vpop.permute.xlu0 %571  ;;  %v2165_v6 = vpop.permute.xlu1 %339 }
  0xc5   :  { %3120 = vst [vmem:[#allocation22_spill] sm:$0xff] %v2153_v3  ;;  %3121 = vst [vmem:[#allocation23_spill] sm:$0xff] %v2165_v6  ;;  %v293_v3 = vrot.slane %v2163_v5, %v2139_v61  ;;  %v155_v6 = vmul.f32 %v129_v15, %v2076_v28  ;;  %v232_v5 = vmul.f32 %v221_v26, %v2102_v42 }
  0xc7   :  { %v235_v1 = vadd.f32 %v227_v57, %v155_v6  ;;  %v310_v13 = vmul.f32 %v293_v3, %v2118_v51 }
  0xc8   :  { %v2194_v25 = vpop.permute.xlu0 %579  ;;  %v2204_v16 = vpop.permute.xlu1 %347 }
  0xc9   :  { %3123 = vst [vmem:[#allocation25_spill] sm:$0xff] %v2194_v25  ;;  %3124 = vst [vmem:[#allocation26_spill] sm:$0xff] %v2204_v16  ;;  %v234_v25 = vadd.f32 %v226_v18, %v154_v34  ;;  %v305_v18 = vrot.slane %v2181_v10, %v2139_v61  ;;  %v301_v16 = vrot.slane %v2176_v9, %v2139_v61 }
  0xcb   :  { %v314_v58 = vadd.f32 %v306_v2, %v234_v25  ;;  %v307_v2 = vmul.f32 %v281_v62, %v2114_v49  ;;  %v313_v30 = vmul.f32 %v305_v18, %v2120_v52  ;;  %v3130_v52 = vld [vmem:[#allocation16_spill] sm:$0xff] }
  0xcc   :  { %v3127_v3 = vld [vmem:[#allocation23_spill] sm:$0xff]  ;;  %v312_v18 = vmul.f32 %v301_v16, %v3130_v52 }
  0xcd   :  { %v324_v34 = vpop.permute.xlu0 %323  ;;  %v2232_v45 = vpop.permute.xlu1 %428  ;;  %v315_v49 = vadd.f32 %v307_v2, %v235_v1 }
  0xce   :  { %v386_v47 = vmul.f32 %v357_v56, %v324_v34  ;;  %v157_v56 = vmul.f32 %v137_v12, %v2078_v29  ;;  %v387_v34 = vmul.f32 %v361_v17, %v2124_v55  ;;  %v156_v12 = vmul.f32 %v133_v53, %v2074_v27 }
  0xcf   :  { %v159_v55 = vmul.f32 %v145_v21, %v2082_v31  ;;  %v311_v27 = vmul.f32 %v297_v11, %v2116_v50  ;;  %v233_v31 = vmul.f32 %v225_v22, %v2096_v39  ;;  %v238_v11 = vadd.f32 %v230_v4, %v158_v44 }
  0xd0   :  { %v394_v25 = vadd.f32 %v386_v47, %v314_v58  ;;  %v377_v47 = vrot.slane %v2171_v8, %v2192_v24  ;;  %v237_v29 = vadd.f32 %v229_v43, %v157_v56  ;;  %v236_v58 = vadd.f32 %v228_v19, %v156_v12 }
  0xd1   :  { %v336_v0 = vpop.permute.xlu0 %335  ;;  %v2252_v28 = vpop.permute.xlu1 %438  ;;  %v395_v43 = vadd.f32 %v387_v34, %v315_v49  ;;  %v239_v21 = vadd.f32 %v231_v20, %v159_v55  ;;  %v241_v42 = vadd.f32 %v233_v31, %v161_v7  ;;  %v318_v26 = vadd.f32 %v310_v13, %v238_v11  ;;  %v3132_v31 = vld [vmem:[#allocation13_spill] sm:$0xff] }
  0xd2   :  { %v402_v15 = vadd.f32 %v394_v25, %v2063_v23  ;;  %v389_v17 = vmul.f32 %v369_v36, %v336_v0  ;;  %v317_v6 = vadd.f32 %v309_v35, %v237_v29  ;;  %v316_v40 = vadd.f32 %v308_v48, %v236_v58 }
  0xd3   :  { %v319_v22 = vadd.f32 %v311_v27, %v239_v21  ;;  %v403_v39 = vadd.f32 %v395_v43, %v2063_v23  ;;  %v390_v25 = vmul.f32 %v373_v32, %v3127_v3  ;;  %v321_v32 = vadd.f32 %v313_v30, %v241_v42  ;;  %v3135_v3 = vld [vmem:[#allocation5_spill] sm:$0xff] }
  0xd4   :  { %v410_v57 = vmax.f32 %v402_v15, 0.0  ;;  %v397_v62 = vadd.f32 %v389_v17, %v317_v6  ;;  %v396_v51 = vadd.f32 %v388_v14, %v316_v40  ;;  %v3137_v42 = vmov 3  }
  0xd5   :  { %v344_v8 = vpop.permute.xlu0 %343  ;;  %v2267_v53 = vpop.permute.xlu1 %443  ;;  %v411_v1 = vmax.f32 %v403_v39, 0.0  ;;  %v398_v15 = vadd.f32 %v390_v25, %v318_v26  ;;  %v3136_v25 = vld [vmem:[#allocation19_spill] sm:$0xff] }
  0xd6   :  { %v2265_v37 = vmin.f32 %v410_v57, 6.0  ;;  %v391_v50 = vmul.f32 %v377_v47, %v344_v8  ;;  %v405_v56 = vadd.f32 %v397_v62, %v2063_v23  ;;  %v404_v34 = vadd.f32 %v396_v51, %v2063_v23  ;;  %v3131_v47 = vld [vmem:[#allocation26_spill] sm:$0xff] }
  0xd7   :  { %v392_v12 = vmul.f32 %v381_v63, %v3131_v47  ;;  %v2299_v16 = vmin.f32 %v411_v1, 6.0  ;;  %v3140_v1 = vld [vmem:[#allocation2_spill] sm:$0xff] }
  0xd8   :  { %v506_v54 = vmul.f32 %v2100_v41, %v2265_v37  ;;  %v3128_v41 = vld [vmem:[#allocation12_spill] sm:$0xff]  ;;  %v399_v19 = vadd.f32 %v391_v50, %v319_v22  ;;  %v413_v20 = vmax.f32 %v405_v56, 0.0  ;;  %v412_v57 = vmax.f32 %v404_v34, 0.0  ;;  %v3141_v34 = vld [vmem:[#allocation3_spill] sm:$0xff] }
  0xd9   :  { %v352_v2 = vpop.permute.xlu0 %351  ;;  %v2285_v36 = vpop.permute.xlu1 %453  ;;  %v160_v10 = vmul.f32 %v3129_v33, %v3128_v41  ;;  %v587_v41 = vmul.f32 %v3136_v25, %v2299_v16 }
  0xda   :  { %522 = vrot.lane.b32.xlu1 %v506_v54, %s1909_s23  ;;  %v393_v35 = vmul.f32 %v385_v38, %v352_v2  ;;  %v407_v48 = vadd.f32 %v399_v19, %v2063_v23  ;;  %v406_v38 = vadd.f32 %v398_v15, %v2063_v23  ;;  %v2302_v58 = vmin.f32 %v413_v20, 6.0  ;;  %v3134_v2 = vld [vmem:[#allocation15_spill] sm:$0xff]  ;;  %v3142_v15 = vld [vmem:[#allocation4_spill] sm:$0xff] }
  0xdb   :  { %v240_v0 = vadd.f32 %v232_v5, %v160_v10  ;;  %v2306_v8 = vmin.f32 %v412_v57, 6.0 }
  0xdc   :  { %v401_v49 = vadd.f32 %v393_v35, %v321_v32  ;;  %v415_v4 = vmax.f32 %v407_v48, 0.0  ;;  %v414_v27 = vmax.f32 %v406_v38, 0.0  ;;  %v509_v13 = vmul.f32 %v3132_v31, %v2302_v58  ;;  %v3146_v31 = vld [vmem:[#allocation8_spill] sm:$0xff] }
  0xdd   :  { %v2296_v29 = vpop.permute.xlu1 %463  ;;  %v320_v9 = vadd.f32 %v312_v18, %v240_v0  ;;  %v3138_v18 = vld [vmem:[#allocation22_spill] sm:$0xff]  ;;  %v3139_v0 = vld [vmem:[#allocation25_spill] sm:$0xff] }
  0xde   :  { %v409_v6 = vadd.f32 %v401_v49, %v2063_v23  ;;  %v2310_v46 = vmin.f32 %v415_v4, 6.0  ;;  %v2315_v40 = vmin.f32 %v414_v27, 6.0 }
  0xdf   :  { %v400_v17 = vadd.f32 %v392_v12, %v320_v9 }
  0xe0   :  { %v417_v44 = vmax.f32 %v409_v6, 0.0  ;;  %v511_v7 = vmul.f32 %v3133_v59, %v2310_v46  ;;  %v590_v56 = vmul.f32 %v3138_v18, %v2315_v40 }
  0xe1   :  { %v408_v43 = vadd.f32 %v400_v17, %v2063_v23 }
  0xe2   :  { %v480_v55 = vpop.permute.xlu1 %479  ;;  %v2319_v23 = vmin.f32 %v417_v44, 6.0  ;;  %v3145_v44 = vld [vmem:[#allocation7_spill] sm:$0xff] }
  0xe3   :  { %v507_v63 = vmul.f32 %v480_v55, %v2299_v16  ;;  %v416_v62 = vmax.f32 %v408_v43, 0.0  ;;  %v3144_v43 = vld [vmem:[#allocation9_spill] sm:$0xff] }
  0xe4   :  { %v513_v22 = vmul.f32 %v3134_v2, %v2319_v23 }
  0xe5   :  { %524 = vrot.lane.b32.xlu0 %v507_v63, %s1909_s23  ;;  %v2324_v11 = vmin.f32 %v416_v62, 6.0  ;;  %v3143_v63 = vld [vmem:[#allocation6_spill] sm:$0xff] }
  0xe6   :  { %v484_v14 = vpop.permute.xlu1 %483 }
  0xe7   :  { %v508_v21 = vmul.f32 %v484_v14, %v2306_v8  ;;  %v592_v32 = vmul.f32 %v3139_v0, %v2324_v11 }
  0xe9   :  { %528 = vrot.lane.b32.xlu0 %v509_v13, %s1909_s23  ;;  %526 = vrot.lane.b32.xlu1 %v508_v21, %s1909_s23  ;;  %v3090_v13 = vmov 4  }
  0xea   :  { %v492_v50 = vpop.permute.xlu1 %491 }
  0xeb   :  { %v510_v54 = vmul.f32 %v492_v50, %v2315_v40 }
  0xed   :  { %532 = vrot.lane.b32.xlu0 %v511_v7, %s1909_s23  ;;  %530 = vrot.lane.b32.xlu1 %v510_v54, %s1909_s23 }
  0xee   :  { %v500_v5 = vpop.permute.xlu1 %499 }
  0xef   :  { %v512_v30 = vmul.f32 %v500_v5, %v2324_v11 }
  0xf1   :  { %536 = vrot.lane.b32.xlu0 %v513_v22, %s1909_s23  ;;  %534 = vrot.lane.b32.xlu1 %v512_v30, %s1909_s23 }
  0xf3   :  { %v556_v39 = vpop.permute.xlu1 %555 }
  0xf4   :  { %v586_v51 = vmul.f32 %v556_v39, %v2265_v37 }
  0xf5   :  { %583 = vperm.xlu1 %1868, %v3135_v3  }
  0xf6   :  { %602 = vrot.lane.b32.xlu0 %v586_v51, %s1910_s24 }
  0xf7   :  { %v564_v33 = vpop.permute.xlu1 %563 }
  0xf8   :  { %v588_v10 = vmul.f32 %v564_v33, %v2306_v8 }
  0xf9   :  { %604 = vrot.lane.b32.xlu1 %v587_v41, %s1910_s24 }
  0xfa   :  { %606 = vrot.lane.b32.xlu0 %v588_v10, %s1910_s24  ;;  %1870 = vset.pattern.permute.xlu1 %v3137_v42 }
  0xfb   :  { %v568_v26 = vpop.permute.xlu1 %567 }
  0xfc   :  { %v589_v52 = vmul.f32 %v568_v26, %v2302_v58 }
  0xfe   :  { %610 = vrot.lane.b32.xlu0 %v590_v56, %s1910_s24  ;;  %608 = vrot.lane.b32.xlu1 %v589_v52, %s1910_s24 }
  0xff   :  { %v576_v19 = vpop.permute.xlu1 %575 }
 0x100   :  { %v591_v35 = vmul.f32 %v576_v19, %v2310_v46  ;;  %v3088_v19 = vmov 5  }
 0x102   :  { %614 = vrot.lane.b32.xlu0 %v592_v32, %s1910_s24  ;;  %612 = vrot.lane.b32.xlu1 %v591_v35, %s1910_s24 }
 0x106   :  { %635 = vperm.xlu0 %1869, %v3140_v1  }
 0x10a   :  { %647 = vperm.xlu0 %1869, %v3141_v34  }
 0x10e   :  { %655 = vperm.xlu0 %1869, %v3142_v15  }
 0x112   :  { %663 = vperm.xlu0 %1869, %v3135_v3  }
 0x116   :  { %1872 = vset.pattern.permute.xlu0 %v3090_v13 }
 0x14c   :  { %v2360_v9 = vpop.permute.xlu1 %522 }
 0x157   :  { %v2356_v47 = vpop.permute.xlu0 %524 }
 0x15b   :  { %v2358_v12 = vpop.permute.xlu0 %528  ;;  %v2362_v20 = vpop.permute.xlu1 %526 }
 0x15f   :  { %v2364_v48 = vpop.permute.xlu0 %532  ;;  %v2366_v49 = vpop.permute.xlu1 %530 }
 0x163   :  { %v2368_v57 = vpop.permute.xlu0 %536  ;;  %v2370_v38 = vpop.permute.xlu1 %534 }
 0x168   :  { %v2372_v17 = vpop.permute.xlu0 %602 }
 0x16c   :  { %v2375_v6 = vpop.permute.xlu0 %606 }
 0x170   :  { %v584_v55 = vpop.permute.xlu1 %583  ;;  %v2379_v27 = vpop.permute.xlu0 %610 }
 0x171   :  { %v593_v4 = vmul.f32 %v584_v55, %v2319_v23 }
 0x173   :  { %616 = vrot.lane.b32.xlu1 %v593_v4, %s1910_s24 }
 0x174   :  { %v2382_v14 = vpop.permute.xlu0 %614  ;;  %v2389_v50 = vpop.permute.xlu1 %604 }
 0x177   :  { %639 = vperm.xlu1 %1870, %v3143_v63  }
 0x178   :  { %v2391_v54 = vpop.permute.xlu1 %608 }
 0x17b   :  { %643 = vperm.xlu1 %1870, %v3144_v43  }
 0x17c   :  { %v2393_v59 = vpop.permute.xlu1 %612 }
 0x17f   :  { %651 = vperm.xlu1 %1870, %v3145_v44  }
 0x181   :  { %v636_v21 = vpop.permute.xlu0 %635 }
 0x182   :  { %v666_v62 = vmul.f32 %v636_v21, %v2265_v37 }
 0x183   :  { %659 = vperm.xlu1 %1870, %v3146_v31  }
 0x185   :  { %v648_v5 = vpop.permute.xlu0 %647 }
 0x186   :  { %v669_v51 = vmul.f32 %v648_v5, %v2302_v58 }
 0x187   :  { %682 = vrot.lane.b32.xlu1 %v666_v62, %s1912_s25 }
 0x188   :  { %1871 = vset.pattern.permute.xlu1 %v3090_v13 }
 0x189   :  { %v656_v22 = vpop.permute.xlu0 %655 }
 0x18a   :  { %v671_v33 = vmul.f32 %v656_v22, %v2310_v46 }
 0x18d   :  { %v664_v26 = vpop.permute.xlu0 %663 }
 0x18e   :  { %v673_v18 = vmul.f32 %v664_v26, %v2319_v23 }
 0x1e5   :  { %v2395_v7 = vpop.permute.xlu1 %616 }
 0x1e6   :  { %3147 = vst [vmem:[#allocation23_spill] sm:$0xff] %v2395_v7 }
 0x1f2   :  { %v640_v30 = vpop.permute.xlu1 %639 }
 0x1f3   :  { %v667_v2 = vmul.f32 %v640_v30, %v2299_v16 }
 0x1f5   :  { %684 = vrot.lane.b32.xlu0 %v667_v2, %s1912_s25 }
 0x1f6   :  { %v644_v39 = vpop.permute.xlu1 %643 }
 0x1f7   :  { %v668_v25 = vmul.f32 %v644_v39, %v2306_v8 }
 0x1f9   :  { %688 = vrot.lane.b32.xlu0 %v669_v51, %s1912_s25  ;;  %686 = vrot.lane.b32.xlu1 %v668_v25, %s1912_s25 }
 0x1fa   :  { %v652_v41 = vpop.permute.xlu1 %651 }
 0x1fb   :  { %v670_v10 = vmul.f32 %v652_v41, %v2315_v40 }
 0x1fd   :  { %692 = vrot.lane.b32.xlu0 %v671_v33, %s1912_s25  ;;  %690 = vrot.lane.b32.xlu1 %v670_v10, %s1912_s25 }
 0x1fe   :  { %v660_v52 = vpop.permute.xlu1 %659 }
 0x1ff   :  { %v672_v56 = vmul.f32 %v660_v52, %v2324_v11 }
 0x201   :  { %696 = vrot.lane.b32.xlu0 %v673_v18, %s1912_s25  ;;  %694 = vrot.lane.b32.xlu1 %v672_v56, %s1912_s25 }
 0x202   :  { %v2416_v0 = vpop.permute.xlu1 %682 }
 0x205   :  { %719 = vperm.xlu0 %1872, %v3143_v63   ;;  %715 = vperm.xlu1 %1871, %v3140_v1  }
 0x209   :  { %731 = vperm.xlu0 %1872, %v3145_v44   ;;  %723 = vperm.xlu1 %1871, %v3144_v43  }
 0x20d   :  { %739 = vperm.xlu0 %1872, %v3146_v31   ;;  %727 = vperm.xlu1 %1871, %v3141_v34  }
 0x211   :  { %735 = vperm.xlu1 %1871, %v3142_v15   ;;  %1873 = vset.pattern.permute.xlu0 %v3088_v19 }
 0x215   :  { %743 = vperm.xlu1 %1871, %v3135_v3  }
 0x219   :  { %1874 = vset.pattern.permute.xlu1 %v3088_v19 }
 0x267   :  { %v2414_v35 = vpop.permute.xlu0 %684 }
 0x26b   :  { %v2418_v32 = vpop.permute.xlu0 %688  ;;  %v2420_v55 = vpop.permute.xlu1 %686 }
 0x26c   :  { %3148 = vst [vmem:[#allocation12_spill] sm:$0xff] %v2420_v55 }
 0x26f   :  { %v2422_v4 = vpop.permute.xlu0 %692  ;;  %v2424_v21 = vpop.permute.xlu1 %690 }
 0x273   :  { %v2426_v62 = vpop.permute.xlu0 %696  ;;  %v2428_v5 = vpop.permute.xlu1 %694 }
 0x274   :  { %3149 = vst [vmem:[#allocation16_spill] sm:$0xff] %v2426_v62  ;;  %3150 = vst [vmem:[#allocation26_spill] sm:$0xff] %v2428_v5 }
 0x280   :  { %v720_v30 = vpop.permute.xlu0 %719  ;;  %v716_v2 = vpop.permute.xlu1 %715 }
 0x281   :  { %v747_v22 = vmul.f32 %v720_v30, %v2299_v16  ;;  %v746_v39 = vmul.f32 %v716_v2, %v2265_v37 }
 0x283   :  { %764 = vrot.lane.b32.xlu1 %v747_v22, %s1914_s26  ;;  %762 = vrot.lane.b32.xlu0 %v746_v39, %s1914_s26  ;;  %v3086_v39 = vmov 6  }
 0x284   :  { %v732_v51 = vpop.permute.xlu0 %731  ;;  %v724_v25 = vpop.permute.xlu1 %723 }
 0x285   :  { %v748_v41 = vmul.f32 %v724_v25, %v2306_v8  ;;  %v750_v10 = vmul.f32 %v732_v51, %v2315_v40 }
 0x287   :  { %766 = vrot.lane.b32.xlu0 %v748_v41, %s1914_s26 }
 0x288   :  { %v728_v33 = vpop.permute.xlu1 %727  ;;  %v740_v52 = vpop.permute.xlu0 %739 }
 0x289   :  { %v749_v26 = vmul.f32 %v728_v33, %v2302_v58  ;;  %v752_v56 = vmul.f32 %v740_v52, %v2324_v11 }
 0x28b   :  { %770 = vrot.lane.b32.xlu0 %v750_v10, %s1914_s26  ;;  %768 = vrot.lane.b32.xlu1 %v749_v26, %s1914_s26 }
 0x28c   :  { %v736_v18 = vpop.permute.xlu1 %735 }
 0x28d   :  { %v751_v30 = vmul.f32 %v736_v18, %v2310_v46 }
 0x28f   :  { %774 = vrot.lane.b32.xlu0 %v752_v56, %s1914_s26  ;;  %772 = vrot.lane.b32.xlu1 %v751_v30, %s1914_s26 }
 0x290   :  { %v744_v2 = vpop.permute.xlu1 %743 }
 0x291   :  { %v753_v22 = vmul.f32 %v744_v2, %v2319_v23 }
 0x293   :  { %795 = vperm.xlu0 %1873, %v3140_v1   ;;  %776 = vrot.lane.b32.xlu1 %v753_v22, %s1914_s26 }
 0x297   :  { %807 = vperm.xlu0 %1873, %v3141_v34   ;;  %799 = vperm.xlu1 %1874, %v3143_v63  }
 0x29b   :  { %815 = vperm.xlu0 %1873, %v3142_v15   ;;  %803 = vperm.xlu1 %1874, %v3144_v43  }
 0x29f   :  { %823 = vperm.xlu0 %1873, %v3135_v3   ;;  %811 = vperm.xlu1 %1874, %v3145_v44  }
 0x2a3   :  { %819 = vperm.xlu1 %1874, %v3146_v31   ;;  %1876 = vset.pattern.permute.xlu0 %v3086_v39 }
 0x2a7   :  { %1875 = vset.pattern.permute.xlu1 %v3086_v39 }
 0x2f5   :  { %v2456_v51 = vpop.permute.xlu0 %762  ;;  %v2458_v25 = vpop.permute.xlu1 %764 }
 0x2f9   :  { %v2460_v41 = vpop.permute.xlu0 %766 }
 0x2fa   :  { %3151 = vst [vmem:[#allocation13_spill] sm:$0xff] %v2460_v41 }
 0x2fd   :  { %v2462_v33 = vpop.permute.xlu1 %768  ;;  %v2464_v10 = vpop.permute.xlu0 %770 }
 0x301   :  { %v2466_v26 = vpop.permute.xlu1 %772  ;;  %v2468_v52 = vpop.permute.xlu0 %774 }
 0x302   :  { %3152 = vst [vmem:[#allocation14_spill] sm:$0xff] %v2466_v26  ;;  %3153 = vst [vmem:[#allocation15_spill] sm:$0xff] %v2468_v52 }
 0x305   :  { %v2470_v18 = vpop.permute.xlu1 %776 }
 0x306   :  { %3154 = vst [vmem:[#allocation5_spill] sm:$0xff] %v2470_v18 }
 0x30e   :  { %v796_v56 = vpop.permute.xlu0 %795 }
 0x30f   :  { %v826_v30 = vmul.f32 %v796_v56, %v2265_v37 }
 0x311   :  { %842 = vrot.lane.b32.xlu1 %v826_v30, %s1916_s27 }
 0x312   :  { %v808_v2 = vpop.permute.xlu0 %807  ;;  %v800_v22 = vpop.permute.xlu1 %799 }
 0x313   :  { %v827_v39 = vmul.f32 %v800_v22, %v2299_v16  ;;  %v829_v24 = vmul.f32 %v808_v2, %v2302_v58 }
 0x315   :  { %844 = vrot.lane.b32.xlu0 %v827_v39, %s1916_s27 }
 0x316   :  { %v816_v19 = vpop.permute.xlu0 %815  ;;  %v804_v13 = vpop.permute.xlu1 %803 }
 0x317   :  { %v828_v61 = vmul.f32 %v804_v13, %v2306_v8  ;;  %v831_v52 = vmul.f32 %v816_v19, %v2310_v46 }
 0x319   :  { %848 = vrot.lane.b32.xlu0 %v829_v24, %s1916_s27  ;;  %846 = vrot.lane.b32.xlu1 %v828_v61, %s1916_s27  ;;  %v3098_v24 = vmov 7  }
 0x31a   :  { %v812_v60 = vpop.permute.xlu1 %811  ;;  %v824_v18 = vpop.permute.xlu0 %823 }
 0x31b   :  { %v830_v56 = vmul.f32 %v812_v60, %v2315_v40  ;;  %v833_v22 = vmul.f32 %v824_v18, %v2319_v23 }
 0x31d   :  { %852 = vrot.lane.b32.xlu0 %v831_v52, %s1916_s27  ;;  %850 = vrot.lane.b32.xlu1 %v830_v56, %s1916_s27 }
 0x31e   :  { %v820_v30 = vpop.permute.xlu1 %819 }
 0x31f   :  { %v832_v39 = vmul.f32 %v820_v30, %v2324_v11 }
 0x321   :  { %856 = vrot.lane.b32.xlu0 %v833_v22, %s1916_s27  ;;  %854 = vrot.lane.b32.xlu1 %v832_v39, %s1916_s27 }
 0x325   :  { %879 = vperm.xlu0 %1876, %v3143_v63   ;;  %875 = vperm.xlu1 %1875, %v3140_v1  }
 0x329   :  { %891 = vperm.xlu0 %1876, %v3145_v44   ;;  %883 = vperm.xlu1 %1875, %v3144_v43  }
 0x32d   :  { %899 = vperm.xlu0 %1876, %v3146_v31   ;;  %887 = vperm.xlu1 %1875, %v3141_v34  }
 0x331   :  { %895 = vperm.xlu1 %1875, %v3142_v15   ;;  %1877 = vset.pattern.permute.xlu0 %v3098_v24 }
 0x335   :  { %903 = vperm.xlu1 %1875, %v3135_v3  }
 0x339   :  { %1878 = vset.pattern.permute.xlu1 %v3098_v24 }
 0x383   :  { %v2492_v61 = vpop.permute.xlu1 %842 }
 0x387   :  { %v2490_v60 = vpop.permute.xlu0 %844 }
 0x38b   :  { %v2494_v13 = vpop.permute.xlu0 %848  ;;  %v2496_v19 = vpop.permute.xlu1 %846 }
 0x38c   :  { %3155 = vst [vmem:[#allocation19_spill] sm:$0xff] %v2496_v19 }
 0x38f   :  { %v2498_v52 = vpop.permute.xlu0 %852  ;;  %v2500_v18 = vpop.permute.xlu1 %850 }
 0x390   :  { %3156 = vst [vmem:[#allocation22_spill] sm:$0xff] %v2498_v52 }
 0x393   :  { %v2502_v2 = vpop.permute.xlu0 %856  ;;  %v2504_v56 = vpop.permute.xlu1 %854 }
 0x394   :  { %3157 = vst [vmem:[#allocation25_spill] sm:$0xff] %v2502_v2  ;;  %3158 = vst [vmem:[#allocation2_spill] sm:$0xff] %v2504_v56 }
 0x3a0   :  { %v880_v30 = vpop.permute.xlu0 %879  ;;  %v876_v22 = vpop.permute.xlu1 %875 }
 0x3a1   :  { %v907_v39 = vmul.f32 %v880_v30, %v2299_v16  ;;  %v906_v24 = vmul.f32 %v876_v22, %v2265_v37 }
 0x3a3   :  { %924 = vrot.lane.b32.xlu1 %v907_v39, %s1918_s28  ;;  %922 = vrot.lane.b32.xlu0 %v906_v24, %s1918_s28 }
 0x3a4   :  { %v892_v5 = vpop.permute.xlu0 %891  ;;  %v884_v41 = vpop.permute.xlu1 %883 }
 0x3a5   :  { %v908_v19 = vmul.f32 %v884_v41, %v2306_v8  ;;  %v910_v62 = vmul.f32 %v892_v5, %v2315_v40 }
 0x3a7   :  { %926 = vrot.lane.b32.xlu0 %v908_v19, %s1918_s28 }
 0x3a8   :  { %v888_v52 = vpop.permute.xlu1 %887  ;;  %v900_v56 = vpop.permute.xlu0 %899 }
 0x3a9   :  { %v909_v2 = vmul.f32 %v888_v52, %v2302_v58  ;;  %v912_v30 = vmul.f32 %v900_v56, %v2324_v11 }
 0x3ab   :  { %930 = vrot.lane.b32.xlu0 %v910_v62, %s1918_s28  ;;  %928 = vrot.lane.b32.xlu1 %v909_v2, %s1918_s28  ;;  %v1919_v62 = vmov 8  }
 0x3ac   :  { %v896_v26 = vpop.permute.xlu1 %895 }
 0x3ad   :  { %v911_v22 = vmul.f32 %v896_v26, %v2310_v46 }
 0x3af   :  { %934 = vrot.lane.b32.xlu0 %v912_v30, %s1918_s28  ;;  %932 = vrot.lane.b32.xlu1 %v911_v22, %s1918_s28 }
 0x3b0   :  { %v904_v24 = vpop.permute.xlu1 %903 }
 0x3b1   :  { %v913_v39 = vmul.f32 %v904_v24, %v2319_v23 }
 0x3b3   :  { %955 = vperm.xlu0 %1877, %v3140_v1   ;;  %936 = vrot.lane.b32.xlu1 %v913_v39, %s1918_s28 }
 0x3b7   :  { %967 = vperm.xlu0 %1877, %v3141_v34   ;;  %959 = vperm.xlu1 %1878, %v3143_v63  }
 0x3bb   :  { %975 = vperm.xlu0 %1877, %v3142_v15   ;;  %963 = vperm.xlu1 %1878, %v3144_v43  }
 0x3bf   :  { %983 = vperm.xlu0 %1877, %v3135_v3   ;;  %971 = vperm.xlu1 %1878, %v3145_v44  }
 0x3c3   :  { %979 = vperm.xlu1 %1878, %v3146_v31   ;;  %1880 = vset.pattern.permute.xlu0 %v1919_v62 }
 0x3c7   :  { %1879 = vset.pattern.permute.xlu1 %v1919_v62 }
 0x415   :  { %v2522_v5 = vpop.permute.xlu0 %922  ;;  %v2524_v41 = vpop.permute.xlu1 %924 }
 0x419   :  { %v2526_v26 = vpop.permute.xlu0 %926 }
 0x41a   :  { %3159 = vst [vmem:[#allocation3_spill] sm:$0xff] %v2526_v26 }
 0x41d   :  { %v2528_v19 = vpop.permute.xlu1 %928  ;;  %v2530_v52 = vpop.permute.xlu0 %930 }
 0x41e   :  { %3160 = vst [vmem:[#allocation4_spill] sm:$0xff] %v2528_v19  ;;  %3161 = vst [vmem:[#allocation6_spill] sm:$0xff] %v2530_v52 }
 0x421   :  { %v2532_v2 = vpop.permute.xlu1 %932  ;;  %v2534_v56 = vpop.permute.xlu0 %934 }
 0x422   :  { %3162 = vst [vmem:[#allocation9_spill] sm:$0xff] %v2532_v2  ;;  %3163 = vst [vmem:[#allocation7_spill] sm:$0xff] %v2534_v56 }
 0x425   :  { %v2536_v30 = vpop.permute.xlu1 %936 }
 0x426   :  { %3164 = vst [vmem:[#allocation8_spill] sm:$0xff] %v2536_v30 }
 0x42e   :  { %v956_v22 = vpop.permute.xlu0 %955 }
 0x42f   :  { %v986_v24 = vmul.f32 %v956_v22, %v2265_v37 }
 0x431   :  { %1002 = vrot.lane.b32.xlu1 %v986_v24, %s1920_s29 }
 0x432   :  { %v968_v39 = vpop.permute.xlu0 %967  ;;  %v960_v62 = vpop.permute.xlu1 %959 }
 0x433   :  { %v987_v55 = vmul.f32 %v960_v62, %v2299_v16  ;;  %v989_v7 = vmul.f32 %v968_v39, %v2302_v58 }
 0x435   :  { %1004 = vrot.lane.b32.xlu0 %v987_v55, %s1920_s29 }
 0x436   :  { %v976_v26 = vpop.permute.xlu0 %975  ;;  %v964_v19 = vpop.permute.xlu1 %963 }
 0x437   :  { %v988_v2 = vmul.f32 %v964_v19, %v2306_v8  ;;  %v991_v30 = vmul.f32 %v976_v26, %v2310_v46 }
 0x439   :  { %1008 = vrot.lane.b32.xlu0 %v989_v7, %s1920_s29  ;;  %1006 = vrot.lane.b32.xlu1 %v988_v2, %s1920_s29  ;;  %v3165_v7 = vmov 0  }
 0x43a   :  { %v972_v56 = vpop.permute.xlu1 %971  ;;  %v984_v52 = vpop.permute.xlu0 %983 }
 0x43b   :  { %v990_v22 = vmul.f32 %v972_v56, %v2315_v40  ;;  %v993_v62 = vmul.f32 %v984_v52, %v2319_v23 }
 0x43d   :  { %1012 = vrot.lane.b32.xlu0 %v991_v30, %s1920_s29  ;;  %1010 = vrot.lane.b32.xlu1 %v990_v22, %s1920_s29 }
 0x43e   :  { %v980_v24 = vpop.permute.xlu1 %979 }
 0x43f   :  { %v992_v55 = vmul.f32 %v980_v24, %v2324_v11 }
 0x441   :  { %1016 = vrot.lane.b32.xlu0 %v993_v62, %s1920_s29  ;;  %1014 = vrot.lane.b32.xlu1 %v992_v55, %s1920_s29 }
 0x445   :  { %1039 = vperm.xlu0 %1880, %v3143_v63   ;;  %1035 = vperm.xlu1 %1879, %v3140_v1  }
 0x449   :  { %1051 = vperm.xlu0 %1880, %v3145_v44   ;;  %1043 = vperm.xlu1 %1879, %v3144_v43  }
 0x44d   :  { %1059 = vperm.xlu0 %1880, %v3146_v31   ;;  %1047 = vperm.xlu1 %1879, %v3141_v34  }
 0x451   :  { %1881 = vset.pattern.permute.xlu0 %v3165_v7  ;;  %1055 = vperm.xlu1 %1879, %v3142_v15  }
 0x452   :  { %433 = vperm.xlu0 %1881, %v3143_v63  }
 0x455   :  { %1063 = vperm.xlu1 %1879, %v3135_v3  }
 0x456   :  { %448 = vperm.xlu0 %1881, %v3145_v44  }
 0x459   :  { %1882 = vset.pattern.permute.xlu1 %v3165_v7 }
 0x45a   :  { %458 = vperm.xlu0 %1881, %v3146_v31  }
 0x4a3   :  { %v2559_v43 = vpop.permute.xlu1 %1002 }
 0x4a7   :  { %v1005_v1 = vpop.permute.xlu0 %1004 }
 0x4ab   :  { %v2561_v26 = vpop.permute.xlu0 %1008  ;;  %v2563_v34 = vpop.permute.xlu1 %1006 }
 0x4af   :  { %v2565_v19 = vpop.permute.xlu0 %1012  ;;  %v2567_v15 = vpop.permute.xlu1 %1010 }
 0x4b3   :  { %v2569_v63 = vpop.permute.xlu0 %1016  ;;  %v2571_v3 = vpop.permute.xlu1 %1014 }
 0x4c0   :  { %v1040_v44 = vpop.permute.xlu0 %1039  ;;  %v1036_v52 = vpop.permute.xlu1 %1035 }
 0x4c1   :  { %v1067_v2 = vmul.f32 %v1040_v44, %v2299_v16  ;;  %v1066_v31 = vmul.f32 %v1036_v52, %v2265_v37 }
 0x4c3   :  { %1084 = vrot.lane.b32.xlu1 %v1067_v2, %s1921_s30  ;;  %1082 = vrot.lane.b32.xlu0 %v1066_v31, %s1921_s30 }
 0x4c4   :  { %v1052_v56 = vpop.permute.xlu0 %1051  ;;  %v1044_v30 = vpop.permute.xlu1 %1043 }
 0x4c5   :  { %v1068_v39 = vmul.f32 %v1044_v30, %v2306_v8  ;;  %v1070_v62 = vmul.f32 %v1052_v56, %v2315_v40  ;;  %v2585_v56 = vld [vmem:[%s3054_s3] sm:$0xf] }
 0x4c7   :  { %1086 = vrot.lane.b32.xlu0 %v1068_v39, %s1921_s30 }
 0x4c8   :  { %v1060_v22 = vpop.permute.xlu0 %1059  ;;  %v1048_v24 = vpop.permute.xlu1 %1047 }
 0x4c9   :  { %v1069_v55 = vmul.f32 %v1048_v24, %v2302_v58  ;;  %v1072_v44 = vmul.f32 %v1060_v22, %v2324_v11 }
 0x4cb   :  { %1090 = vrot.lane.b32.xlu0 %v1070_v62, %s1921_s30  ;;  %1088 = vrot.lane.b32.xlu1 %v1069_v55, %s1921_s30 }
 0x4cc   :  { %v1056_v7 = vpop.permute.xlu1 %1055 }
 0x4cd   :  { %v1071_v52 = vmul.f32 %v1056_v7, %v2310_v46  ;;  %v434_v2 = vpop.permute.xlu0 %433 }
 0x4ce   :  { %v467_v31 = vmul.f32 %v434_v2, %v2299_v16  ;;  %v2594_v16 = vld [vmem:[%s3054_s3 + $0xc] sm:$0xf] }
 0x4cf   :  { %1094 = vrot.lane.b32.xlu0 %v1072_v44, %s1921_s30  ;;  %1092 = vrot.lane.b32.xlu1 %v1071_v52, %s1921_s30  ;;  %v2626_v52 = vld [vmem:[%s3054_s3 + $0x10] sm:$0xf] }
 0x4d0   :  { %v547_v30 = vadd.f32 %v2356_v47, %v467_v31  ;;  %v1064_v39 = vpop.permute.xlu1 %1063  ;;  %v2599_v47 = vld [vmem:[%s3054_s3 + $0x4] sm:$0xf]  ;;  %v3168_v31 = vmov 4  }
 0x4d1   :  { %v1073_v24 = vmul.f32 %v1064_v39, %v2319_v23 }
 0x4d2   :  { %v627_v62 = vadd.f32 %v2389_v50, %v547_v30  ;;  %v2607_v50 = vld [vmem:[%s3054_s3 + $0x14] sm:$0xf]  ;;  %v449_v30 = vpop.permute.xlu0 %448 }
 0x4d3   :  { %1140 = vperm.xlu0 %1881, %v2585_v56   ;;  %1096 = vrot.lane.b32.xlu1 %v1073_v24, %s1921_s30  ;;  %v470_v39 = vmul.f32 %v449_v30, %v2315_v40  ;;  %v466_v40 = vmul.f32 %v2232_v45, %v2265_v37  ;;  %v3173_v30 = vld [vmem:[#allocation12_spill] sm:$0xff] }
 0x4d4   :  { %v707_v22 = vadd.f32 %v2414_v35, %v627_v62  ;;  %v2612_v35 = vld [vmem:[%s3054_s3 + $0x8] sm:$0xf] }
 0x4d5   :  { %v550_v24 = vadd.f32 %v2366_v49, %v470_v39  ;;  %v469_v49 = vmul.f32 %v2267_v53, %v2302_v58  ;;  %v468_v58 = vmul.f32 %v2252_v28, %v2306_v8 }
 0x4d6   :  { %v787_v55 = vadd.f32 %v2458_v25, %v707_v22  ;;  %v2621_v25 = vld [vmem:[%s3054_s3 + $0x1c] sm:$0xf] }
 0x4d7   :  { %1155 = vperm.xlu0 %1881, %v2594_v16   ;;  %1145 = vperm.xlu1 %1882, %v2599_v47   ;;  %v630_v62 = vadd.f32 %v2379_v27, %v550_v24 }
 0x4d8   :  { %v867_v7 = vadd.f32 %v2490_v60, %v787_v55  ;;  %v2635_v60 = vld [vmem:[%s3054_s3 + $0x18] sm:$0xf]  ;;  %v459_v55 = vpop.permute.xlu0 %458 }
 0x4d9   :  { %v710_v22 = vadd.f32 %v2424_v21, %v630_v62  ;;  %v472_v27 = vmul.f32 %v459_v55, %v2324_v11  ;;  %v471_v21 = vmul.f32 %v2285_v36, %v2310_v46  ;;  %v473_v46 = vmul.f32 %v2296_v29, %v2319_v23  ;;  %v3179_v55 = vld [vmem:[#allocation22_spill] sm:$0xff] }
 0x4da   :  { %v947_v44 = vadd.f32 %v2524_v41, %v867_v7  ;;  %v3166_v41 = vmov 1   ;;  %v3170_v7 = vmov 6  }
 0x4db   :  { %1165 = vperm.xlu0 %1881, %v2607_v50   ;;  %1150 = vperm.xlu1 %1882, %v2612_v35   ;;  %v790_v37 = vadd.f32 %v2464_v10, %v710_v22  ;;  %v552_v11 = vadd.f32 %v2370_v38, %v472_v27 }
 0x4dc   :  { %v2628_v2 = vadd.f32 %v1005_v1, %v947_v44  ;;  %v3167_v1 = vmov 2   ;;  %v546_v44 = vadd.f32 %v2360_v9, %v466_v40  ;;  %v3178_v40 = vld [vmem:[#allocation26_spill] sm:$0xff] }
 0x4dd   :  { %v870_v36 = vadd.f32 %v2500_v18, %v790_v37  ;;  %v632_v29 = vadd.f32 %v2382_v14, %v552_v11  ;;  %v3175_v14 = vld [vmem:[#allocation4_spill] sm:$0xff]  ;;  %v3183_v11 = vld [vmem:[#allocation9_spill] sm:$0xff] }
 0x4de   :  { %v626_v45 = vadd.f32 %v2372_v17, %v546_v44 }
 0x4df   :  { %1175 = vperm.xlu0 %1881, %v2621_v25   ;;  %1160 = vperm.xlu1 %1882, %v2626_v52   ;;  %v712_v22 = vadd.f32 %v3178_v40, %v632_v29 }
 0x4e0   :  { %v706_v53 = vadd.f32 %v2416_v0, %v626_v45  ;;  %v3180_v45 = vld [vmem:[#allocation5_spill] sm:$0xff] }
 0x4e2   :  { %v786_v17 = vadd.f32 %v2456_v51, %v706_v53  ;;  %v553_v51 = vadd.f32 %v2368_v57, %v473_v46  ;;  %v3182_v53 = vld [vmem:[#allocation19_spill] sm:$0xff]  ;;  %v3185_v46 = vld [vmem:[#allocation25_spill] sm:$0xff] }
 0x4e3   :  { %1884 = vset.pattern.permute.xlu0 %v3166_v41  ;;  %1170 = vperm.xlu1 %1882, %v2635_v60  }
 0x4e4   :  { %1223 = vperm.xlu0 %1884, %v2599_v47   ;;  %v866_v0 = vadd.f32 %v2492_v61, %v786_v17 }
 0x4e6   :  { %v946_v18 = vadd.f32 %v2522_v5, %v866_v0  ;;  %v3177_v5 = vld [vmem:[#allocation13_spill] sm:$0xff] }
 0x4e7   :  { %1883 = vset.pattern.permute.xlu1 %v3166_v41  ;;  %v549_v41 = vadd.f32 %v2358_v12, %v469_v49  ;;  %v551_v12 = vadd.f32 %v2364_v48, %v471_v21  ;;  %v3181_v21 = vmov 7  }
 0x4e8   :  { %1235 = vperm.xlu0 %1884, %v2626_v52   ;;  %1219 = vperm.xlu1 %1883, %v2585_v56  }
 0x4e9   :  { %v631_v38 = vadd.f32 %v2393_v59, %v551_v12  ;;  %v3171_v59 = vld [vmem:[#allocation6_spill] sm:$0xff] }
 0x4eb   :  { %v711_v23 = vadd.f32 %v2422_v4, %v631_v38  ;;  %v1026_v4 = vadd.f32 %v2559_v43, %v946_v18  ;;  %v3187_v38 = vld [vmem:[#allocation11_spill] sm:$0xff] }
 0x4ec   :  { %1243 = vperm.xlu0 %1884, %v2635_v60   ;;  %1227 = vperm.xlu1 %1883, %v2612_v35  }
 0x4f0   :  { %1885 = vset.pattern.permute.xlu0 %v3167_v1  ;;  %1231 = vperm.xlu1 %1883, %v2594_v16  }
 0x4f1   :  { %1299 = vperm.xlu0 %1885, %v2585_v56  }
 0x4f4   :  { %1239 = vperm.xlu1 %1883, %v2607_v50  }
 0x4f5   :  { %1311 = vperm.xlu0 %1885, %v2594_v16  }
 0x4f8   :  { %1247 = vperm.xlu1 %1883, %v2621_v25  }
 0x4f9   :  { %1319 = vperm.xlu0 %1885, %v2607_v50  }
 0x4fc   :  { %1886 = vset.pattern.permute.xlu1 %v3167_v1  ;;  %v629_v1 = vadd.f32 %v2391_v54, %v549_v41  ;;  %v548_v54 = vadd.f32 %v2362_v20, %v468_v58 }
 0x4fd   :  { %1327 = vperm.xlu0 %1885, %v2621_v25   ;;  %1303 = vperm.xlu1 %1886, %v2599_v47  }
 0x4fe   :  { %v709_v9 = vadd.f32 %v2418_v32, %v629_v1  ;;  %v628_v10 = vadd.f32 %v2375_v6, %v548_v54  ;;  %v3174_v6 = vld [vmem:[#allocation14_spill] sm:$0xff] }
 0x500   :  { %v789_v48 = vadd.f32 %v2462_v33, %v709_v9  ;;  %v950_v33 = vadd.f32 %v3171_v59, %v870_v36 }
 0x501   :  { %1888 = vset.pattern.permute.xlu0 %v3137_v42  ;;  %1307 = vperm.xlu1 %1886, %v2612_v35  }
 0x502   :  { %1383 = vperm.xlu0 %1888, %v2599_v47   ;;  %v869_v20 = vadd.f32 %v2494_v13, %v789_v48  ;;  %v3176_v13 = vld [vmem:[#allocation16_spill] sm:$0xff]  ;;  %v1030_v41 = vadd.f32 %v2567_v15, %v950_v33 }
 0x504   :  { %v949_v39 = vadd.f32 %v3175_v14, %v869_v20  ;;  %v3189_v20 = vld [vmem:[#allocation2_spill] sm:$0xff] }
 0x505   :  { %1315 = vperm.xlu1 %1886, %v2626_v52  }
 0x506   :  { %1395 = vperm.xlu0 %1888, %v2626_v52   ;;  %v1029_v44 = vadd.f32 %v2561_v26, %v949_v39  ;;  %v3184_v26 = vld [vmem:[#allocation15_spill] sm:$0xff] }
 0x507   :  { %v792_v36 = vadd.f32 %v3184_v26, %v712_v22 }
 0x509   :  { %1323 = vperm.xlu1 %1886, %v2635_v60   ;;  %v872_v18 = vadd.f32 %v3189_v20, %v792_v36 }
 0x50a   :  { %1403 = vperm.xlu0 %1888, %v2635_v60  }
 0x50d   :  { %1887 = vset.pattern.permute.xlu1 %v3137_v42  ;;  %v3169_v42 = vmov 5  }
 0x50e   :  { %1889 = vset.pattern.permute.xlu0 %v3168_v31  ;;  %1379 = vperm.xlu1 %1887, %v2585_v56  }
 0x50f   :  { %1459 = vperm.xlu0 %1889, %v2585_v56  }
 0x512   :  { %1387 = vperm.xlu1 %1887, %v2612_v35  }
 0x513   :  { %1471 = vperm.xlu0 %1889, %v2594_v16  }
 0x516   :  { %1391 = vperm.xlu1 %1887, %v2594_v16  }
 0x517   :  { %1479 = vperm.xlu0 %1889, %v2607_v50  }
 0x51a   :  { %1399 = vperm.xlu1 %1887, %v2607_v50  }
 0x51b   :  { %1487 = vperm.xlu0 %1889, %v2621_v25  }
 0x51e   :  { %1407 = vperm.xlu1 %1887, %v2621_v25  }
 0x51f   :  { %1892 = vset.pattern.permute.xlu0 %v3169_v42 }
 0x520   :  { %1543 = vperm.xlu0 %1892, %v2599_v47  }
 0x522   :  { %1890 = vset.pattern.permute.xlu1 %v3168_v31  ;;  %v3172_v31 = vld [vmem:[#allocation23_spill] sm:$0xff] }
 0x523   :  { %1463 = vperm.xlu1 %1890, %v2599_v47   ;;  %v633_v61 = vadd.f32 %v3172_v31, %v553_v51  ;;  %v3188_v51 = vld [vmem:[#allocation8_spill] sm:$0xff] }
 0x524   :  { %1555 = vperm.xlu0 %1892, %v2626_v52  }
 0x525   :  { %v713_v24 = vadd.f32 %v3176_v13, %v633_v61 }
 0x527   :  { %1467 = vperm.xlu1 %1890, %v2612_v35   ;;  %v793_v37 = vadd.f32 %v3180_v45, %v713_v24 }
 0x528   :  { %1563 = vperm.xlu0 %1892, %v2635_v60  }
 0x529   :  { %v873_v54 = vadd.f32 %v3185_v46, %v793_v37 }
 0x52b   :  { %1475 = vperm.xlu1 %1890, %v2626_v52  }
 0x52c   :  { %1893 = vset.pattern.permute.xlu0 %v3170_v7 }
 0x52d   :  { %1619 = vperm.xlu0 %1893, %v2585_v56  }
 0x52f   :  { %1483 = vperm.xlu1 %1890, %v2635_v60  }
 0x531   :  { %1631 = vperm.xlu0 %1893, %v2594_v16  }
 0x533   :  { %1891 = vset.pattern.permute.xlu1 %v3169_v42  ;;  %v791_v42 = vadd.f32 %v3174_v6, %v711_v23 }
 0x534   :  { %1539 = vperm.xlu1 %1891, %v2585_v56  }
 0x535   :  { %v1083_v28 = vpop.permute.xlu0 %1082  ;;  %1639 = vperm.xlu0 %1893, %v2607_v50   ;;  %v1085_v8 = vpop.permute.xlu1 %1084  ;;  %v871_v49 = vadd.f32 %v3179_v55, %v791_v42 }
 0x536   :  { %v1107_v32 = vadd.f32 %v1085_v8, %v2628_v2  ;;  %v708_v2 = vadd.f32 %v3173_v30, %v628_v10  ;;  %v1106_v27 = vadd.f32 %v1083_v28, %v1026_v4  ;;  %v3186_v28 = vld [vmem:[#allocation3_spill] sm:$0xff]  ;;  %v953_v10 = vadd.f32 %v3188_v51, %v873_v54  ;;  %v1897_v4 = vld [vmem:[%s3053_s0] sm:$0xf] }
 0x537   :  { %v951_v12 = vadd.f32 %v3183_v11, %v871_v49 }
 0x538   :  { %1547 = vperm.xlu1 %1891, %v2612_v35   ;;  %v788_v62 = vadd.f32 %v3177_v5, %v708_v2  ;;  %v1114_v48 = vadd.f32 %v1106_v27, %v3187_v38  ;;  %v1033_v59 = vadd.f32 %v2569_v63, %v953_v10  ;;  %v1115_v31 = vadd.f32 %v1107_v32, %v3187_v38 }
 0x539   :  { %1647 = vperm.xlu0 %1893, %v2621_v25   ;;  %v1087_v57 = vpop.permute.xlu0 %1086  ;;  %v1031_v8 = vadd.f32 %v2565_v19, %v951_v12 }
 0x53a   :  { %v868_v58 = vadd.f32 %v3182_v53, %v788_v62  ;;  %v1122_v33 = vmax.f32 %v1114_v48, 0.0  ;;  %v1123_v14 = vmax.f32 %v1115_v31, 0.0  ;;  %v3192_v31 = vld [vmem:[#allocation18_spill] sm:$0xff] }
 0x53c   :  { %1551 = vperm.xlu1 %1891, %v2594_v16   ;;  %v948_v15 = vadd.f32 %v3186_v28, %v868_v58  ;;  %v2761_v42 = vmin.f32 %v1122_v33, 6.0  ;;  %v2772_v24 = vmin.f32 %v1123_v14, 6.0 }
 0x53d   :  { %1896 = vset.pattern.permute.xlu0 %v3181_v21  ;;  %v1091_v43 = vpop.permute.xlu0 %1090  ;;  %v1089_v1 = vpop.permute.xlu1 %1088 }
 0x53e   :  { %v1110_v9 = vadd.f32 %v1091_v43, %v1030_v41  ;;  %v1109_v17 = vadd.f32 %v1089_v1, %v1029_v44  ;;  %1703 = vperm.xlu0 %1896, %v2599_v47   ;;  %v1028_v29 = vadd.f32 %v2563_v34, %v948_v15  ;;  %v3190_v34 = vld [vmem:[#allocation7_spill] sm:$0xff] }
 0x53f   :  { %v952_v6 = vadd.f32 %v3190_v34, %v872_v18  ;;  %v1253_v34 = vrot.slane %v2761_v42, %v3192_v31 }
 0x540   :  { %1559 = vperm.xlu1 %1891, %v2607_v50   ;;  %v1108_v19 = vadd.f32 %v1087_v57, %v1028_v29  ;;  %v1117_v61 = vadd.f32 %v1109_v17, %v3187_v38  ;;  %v1118_v62 = vadd.f32 %v1110_v9, %v3187_v38  ;;  %v1899_v9 = vld [vmem:[%s3053_s0 + $0x10] sm:$0xf] }
 0x541   :  { %v1093_v0 = vpop.permute.xlu1 %1092  ;;  %v1095_v57 = vpop.permute.xlu0 %1094  ;;  %v1032_v13 = vadd.f32 %v2571_v3, %v952_v6  ;;  %v1898_v3 = vld [vmem:[%s3053_s0 + $0x8] sm:$0xf] }
 0x542   :  { %v1111_v23 = vadd.f32 %v1093_v0, %v1031_v8  ;;  %1715 = vperm.xlu0 %1896, %v2626_v52   ;;  %v1116_v39 = vadd.f32 %v1108_v19, %v3187_v38  ;;  %v1125_v63 = vmax.f32 %v1117_v61, 0.0  ;;  %v1126_v45 = vmax.f32 %v1118_v62, 0.0 }
 0x544   :  { %1567 = vperm.xlu1 %1891, %v2621_v25   ;;  %v1119_v32 = vadd.f32 %v1111_v23, %v3187_v38  ;;  %v1124_v5 = vmax.f32 %v1116_v39, 0.0  ;;  %v2777_v22 = vmin.f32 %v1125_v63, 6.0  ;;  %v2801_v46 = vmin.f32 %v1126_v45, 6.0 }
 0x545   :  { %v1097_v30 = vpop.permute.xlu1 %1096 }
 0x546   :  { %v1113_v2 = vadd.f32 %v1097_v30, %v1033_v59  ;;  %1723 = vperm.xlu0 %1896, %v2635_v60   ;;  %v1127_v55 = vmax.f32 %v1119_v32, 0.0  ;;  %v2785_v41 = vmin.f32 %v1124_v5, 6.0 }
 0x548   :  { %1894 = vset.pattern.permute.xlu1 %v3170_v7  ;;  %v3191_v7 = vld [vmem:[#allocation20_spill] sm:$0xff]  ;;  %v1121_v49 = vadd.f32 %v1113_v2, %v3187_v38  ;;  %v2790_v1 = vmin.f32 %v1127_v55, 6.0 }
 0x549   :  { %1623 = vperm.xlu1 %1894, %v2599_v47   ;;  %v1181_v40 = vrot.slane %v2761_v42, %v3191_v7  ;;  %v1112_v47 = vadd.f32 %v1095_v57, %v1032_v13  ;;  %v1185_v37 = vrot.slane %v2772_v24, %v3191_v7  ;;  %v1193_v58 = vrot.slane %v2777_v22, %v3191_v7 }
 0x54a   :  { %1794 = vrot.lane.b32.xlu0 %v1897_v4, %s1914_s26  ;;  %v1129_v53 = vmax.f32 %v1121_v49, 0.0  ;;  %v1189_v36 = vrot.slane %v2785_v41, %v3191_v7  ;;  %v1201_v28 = vrot.slane %v2790_v1, %v3191_v7  ;;  %v1197_v10 = vrot.slane %v2801_v46, %v3191_v7 }
 0x54b   :  { %v1120_v43 = vadd.f32 %v1112_v47, %v3187_v38  ;;  %v1900_v38 = vld [vmem:[%s3053_s0 + $0x18] sm:$0xf]  ;;  %v1265_v47 = vrot.slane %v2777_v22, %v3192_v31 }
 0x54d   :  { %1627 = vperm.xlu1 %1894, %v2612_v35   ;;  %v1128_v54 = vmax.f32 %v1120_v43, 0.0  ;;  %v1901_v43 = vld [vmem:[%s3053_s0 + $0x4] sm:$0xf] }
 0x54e   :  { %v1141_v44 = vpop.permute.xlu0 %1140  ;;  %1798 = vrot.lane.b32.xlu0 %v1898_v3, %s1914_s26 }
 0x54f   :  { %v1210_v27 = vmul.f32 %v1181_v40, %v1141_v44  ;;  %v2812_v51 = vmin.f32 %v1128_v54, 6.0 }
 0x551   :  { %1635 = vperm.xlu1 %1894, %v2626_v52   ;;  %v2803_v52 = vmin.f32 %v1129_v53, 6.0  ;;  %v1205_v59 = vrot.slane %v2812_v51, %v3191_v7  ;;  %v1277_v57 = vrot.slane %v2812_v51, %v3192_v31 }
 0x552   :  { %v1156_v11 = vpop.permute.xlu0 %1155  ;;  %v1146_v12 = vpop.permute.xlu1 %1145  ;;  %1802 = vrot.lane.b32.xlu0 %v1899_v9, %s1914_s26 }
 0x553   :  { %v1213_v17 = vmul.f32 %v1193_v58, %v1156_v11  ;;  %v1211_v26 = vmul.f32 %v1185_v37, %v1146_v12  ;;  %v1273_v37 = vrot.slane %v2790_v1, %v3192_v31 }
 0x555   :  { %1643 = vperm.xlu1 %1894, %v2635_v60   ;;  %v1209_v60 = vrot.slane %v2803_v52, %v3191_v7 }
 0x556   :  { %v1166_v15 = vpop.permute.xlu0 %1165  ;;  %v1151_v8 = vpop.permute.xlu1 %1150  ;;  %1806 = vrot.lane.b32.xlu0 %v1900_v38, %s1914_s26 }
 0x557   :  { %v1215_v48 = vmul.f32 %v1201_v28, %v1166_v15  ;;  %v1212_v0 = vmul.f32 %v1189_v36, %v1151_v8  ;;  %v1902_v36 = vld [vmem:[%s3053_s0 + $0xc] sm:$0xf] }
 0x559   :  { %1895 = vset.pattern.permute.xlu1 %v3181_v21  ;;  %v1257_v21 = vrot.slane %v2772_v24, %v3192_v31 }
 0x55a   :  { %v1176_v29 = vpop.permute.xlu0 %1175  ;;  %1699 = vperm.xlu1 %1895, %v2585_v56   ;;  %v1161_v23 = vpop.permute.xlu1 %1160  ;;  %v1269_v56 = vrot.slane %v2801_v46, %v3192_v31 }
 0x55b   :  { %v1217_v20 = vmul.f32 %v1209_v60, %v1176_v29  ;;  %v1214_v18 = vmul.f32 %v1197_v10, %v1161_v23 }
 0x55e   :  { %1707 = vperm.xlu1 %1895, %v2612_v35   ;;  %v1171_v33 = vpop.permute.xlu1 %1170 }
 0x55f   :  { %v1216_v19 = vmul.f32 %v1205_v59, %v1171_v33  ;;  %v1224_v61 = vpop.permute.xlu0 %1223 }
 0x560   :  { %v1283_v30 = vmul.f32 %v1257_v21, %v1224_v61 }
 0x562   :  { %v1291_v2 = vadd.f32 %v1283_v30, %v1211_v26  ;;  %1711 = vperm.xlu1 %1895, %v2594_v16   ;;  %v1261_v16 = vrot.slane %v2785_v41, %v3192_v31 }
 0x563   :  { %v1236_v6 = vpop.permute.xlu0 %1235  ;;  %v1220_v14 = vpop.permute.xlu1 %1219 }
 0x564   :  { %v1286_v39 = vmul.f32 %v1269_v56, %v1236_v6  ;;  %v1282_v35 = vmul.f32 %v1253_v34, %v1220_v14  ;;  %v3194_v56 = vld [vmem:[#allocation24_spill] sm:$0xff] }
 0x565   :  { %v1417_v34 = vrot.slane %v2772_v24, %v3194_v56 }
 0x566   :  { %v2830_v63 = vadd.f32 %v1286_v39, %v1214_v18  ;;  %v1290_v32 = vadd.f32 %v1282_v35, %v1210_v27  ;;  %1719 = vperm.xlu1 %1895, %v2607_v50   ;;  %v3193_v50 = vld [vmem:[#allocation21_spill] sm:$0xff] }
 0x567   :  { %v1244_v4 = vpop.permute.xlu0 %1243  ;;  %v1228_v13 = vpop.permute.xlu1 %1227  ;;  %v1333_v49 = vrot.slane %v2761_v42, %v3193_v50  ;;  %v1345_v58 = vrot.slane %v2777_v22, %v3193_v50  ;;  %v1353_v15 = vrot.slane %v2790_v1, %v3193_v50  ;;  %v1361_v29 = vrot.slane %v2803_v52, %v3193_v50 }
 0x568   :  { %v1288_v5 = vmul.f32 %v1277_v57, %v1244_v4  ;;  %v1284_v62 = vmul.f32 %v1261_v16, %v1228_v13  ;;  %v1337_v23 = vrot.slane %v2772_v24, %v3193_v50  ;;  %v1341_v61 = vrot.slane %v2785_v41, %v3193_v50 }
 0x569   :  { %v1429_v4 = vrot.slane %v2801_v46, %v3194_v56 }
 0x56a   :  { %v2837_v7 = vadd.f32 %v1288_v5, %v1216_v19  ;;  %v1292_v40 = vadd.f32 %v1284_v62, %v1212_v0  ;;  %1727 = vperm.xlu1 %1895, %v2621_v25  }
 0x56b   :  { %v1232_v55 = vpop.permute.xlu1 %1231 }
 0x56c   :  { %v1285_v44 = vmul.f32 %v1265_v47, %v1232_v55  ;;  %v1300_v3 = vpop.permute.xlu0 %1299  ;;  %v1357_v47 = vrot.slane %v2812_v51, %v3193_v50 }
 0x56d   :  { %v1362_v27 = vmul.f32 %v1333_v49, %v1300_v3 }
 0x56e   :  { %v1293_v45 = vadd.f32 %v1285_v44, %v1213_v17  ;;  %1796 = vrot.lane.b32.xlu1 %v1901_v43, %s1914_s26  ;;  %v1281_v17 = vrot.slane %v2803_v52, %v3192_v31 }
 0x56f   :  { %v1370_v25 = vadd.f32 %v1362_v27, %v1290_v32  ;;  %v1240_v53 = vpop.permute.xlu1 %1239  ;;  %v1349_v32 = vrot.slane %v2801_v46, %v3193_v50  ;;  %v3195_v27 = vld [vmem:[#allocation17_spill] sm:$0xff] }
 0x570   :  { %v1287_v11 = vmul.f32 %v1273_v37, %v1240_v53  ;;  %v1312_v12 = vpop.permute.xlu0 %1311 }
 0x571   :  { %v1365_v9 = vmul.f32 %v1345_v58, %v1312_v12 }
 0x572   :  { %v1295_v26 = vadd.f32 %v1287_v11, %v1215_v48  ;;  %1800 = vrot.lane.b32.xlu1 %v1902_v36, %s1914_s26  ;;  %v1903_v48 = vld [vmem:[%s3053_s0 + $0x14] sm:$0xf] }
 0x573   :  { %v2858_v54 = vadd.f32 %v1365_v9, %v1293_v45  ;;  %v1248_v28 = vpop.permute.xlu1 %1247  ;;  %v2894_v45 = vsub.s32 4, %v3195_v27 }
 0x574   :  { %v1289_v8 = vmul.f32 %v1281_v17, %v1248_v28  ;;  %v1320_v38 = vpop.permute.xlu0 %1319  ;;  %v1421_v17 = vrot.slane %v2785_v41, %v3194_v56 }
 0x575   :  { %v1367_v0 = vmul.f32 %v1353_v15, %v1320_v38  ;;  %v1493_v58 = vrot.slane %v2761_v42, %v2894_v45 }
 0x576   :  { %v1297_v60 = vadd.f32 %v1289_v8, %v1217_v20  ;;  %1804 = vrot.lane.b32.xlu1 %v1903_v48, %s1914_s26  ;;  %v1904_v20 = vld [vmem:[%s3053_s0 + $0x1c] sm:$0xf] }
 0x577   :  { %v2866_v10 = vadd.f32 %v1367_v0, %v1295_v26 }
 0x578   :  { %v1328_v18 = vpop.permute.xlu0 %1327  ;;  %v1304_v59 = vpop.permute.xlu1 %1303 }
 0x579   :  { %v1369_v33 = vmul.f32 %v1361_v29, %v1328_v18  ;;  %v1363_v31 = vmul.f32 %v1337_v23, %v1304_v59 }
 0x57a   :  { %1808 = vrot.lane.b32.xlu1 %v1904_v20, %s1914_s26  ;;  %v1521_v20 = vrot.slane %v2803_v52, %v2894_v45 }
 0x57b   :  { %v2876_v21 = vadd.f32 %v1369_v33, %v1297_v60  ;;  %v1371_v19 = vadd.f32 %v1363_v31, %v1291_v2  ;;  %v1425_v60 = vrot.slane %v2777_v22, %v3194_v56  ;;  %v1433_v33 = vrot.slane %v2790_v1, %v3194_v56 }
 0x57c   :  { %v1308_v30 = vpop.permute.xlu1 %1307 }
 0x57d   :  { %v1364_v6 = vmul.f32 %v1341_v61, %v1308_v30  ;;  %v1384_v14 = vpop.permute.xlu0 %1383 }
 0x57e   :  { %v1443_v39 = vmul.f32 %v1417_v34, %v1384_v14  ;;  %v1441_v14 = vrot.slane %v2803_v52, %v3194_v56 }
 0x57f   :  { %v1372_v35 = vadd.f32 %v1364_v6, %v1292_v40  ;;  %v1437_v40 = vrot.slane %v2812_v51, %v3194_v56 }
 0x580   :  { %v1451_v57 = vadd.f32 %v1443_v39, %v1371_v19  ;;  %v1316_v16 = vpop.permute.xlu1 %1315 }
 0x581   :  { %v1366_v2 = vmul.f32 %v1349_v32, %v1316_v16  ;;  %v1396_v13 = vpop.permute.xlu0 %1395 }
 0x582   :  { %v1446_v5 = vmul.f32 %v1429_v4, %v1396_v13 }
 0x583   :  { %v1374_v62 = vadd.f32 %v1366_v2, %v2830_v63  ;;  %v1413_v63 = vrot.slane %v2761_v42, %v3194_v56  ;;  %v1497_v2 = vrot.slane %v2772_v24, %v2894_v45 }
 0x584   :  { %v1324_v55 = vpop.permute.xlu1 %1323 }
 0x585   :  { %v2891_v49 = vadd.f32 %v1446_v5, %v1374_v62  ;;  %v1368_v44 = vmul.f32 %v1357_v47, %v1324_v55  ;;  %v1404_v3 = vpop.permute.xlu0 %1403 }
 0x586   :  { %v1448_v37 = vmul.f32 %v1437_v40, %v1404_v3  ;;  %v1501_v40 = vrot.slane %v2785_v41, %v2894_v45 }
 0x587   :  { %v1376_v43 = vadd.f32 %v1368_v44, %v2837_v7  ;;  %v1505_v7 = vrot.slane %v2777_v22, %v2894_v45 }
 0x589   :  { %v2899_v53 = vadd.f32 %v1448_v37, %v1376_v43  ;;  %v1380_v50 = vpop.permute.xlu1 %1379 }
 0x58a   :  { %v1442_v11 = vmul.f32 %v1413_v63, %v1380_v50  ;;  %v1460_v12 = vpop.permute.xlu0 %1459  ;;  %v1509_v63 = vrot.slane %v2801_v46, %v2894_v45 }
 0x58b   :  { %v1522_v9 = vmul.f32 %v1493_v58, %v1460_v12 }
 0x58c   :  { %v1450_v26 = vadd.f32 %v1442_v11, %v1370_v25  ;;  %v1513_v25 = vrot.slane %v2790_v1, %v2894_v45 }
 0x58d   :  { %v1388_v36 = vpop.permute.xlu1 %1387 }
 0x58e   :  { %v2907_v28 = vadd.f32 %v1522_v9, %v1450_v26  ;;  %v1444_v15 = vmul.f32 %v1421_v17, %v1388_v36  ;;  %v1472_v8 = vpop.permute.xlu0 %1471  ;;  %v1517_v26 = vrot.slane %v2812_v51, %v2894_v45 }
 0x58f   :  { %v1525_v38 = vmul.f32 %v1505_v7, %v1472_v8  ;;  %v2945_v8 = vsub.s32 6, %v3195_v27 }
 0x590   :  { %v1452_v0 = vadd.f32 %v1444_v15, %v1372_v35 }
 0x591   :  { %v1392_v48 = vpop.permute.xlu1 %1391  ;;  %v1653_v45 = vrot.slane %v2761_v42, %v2945_v8 }
 0x592   :  { %v1445_v29 = vmul.f32 %v1425_v60, %v1392_v48  ;;  %v1480_v23 = vpop.permute.xlu0 %1479 }
 0x593   :  { %v1527_v18 = vmul.f32 %v1513_v25, %v1480_v23 }
 0x594   :  { %v1453_v59 = vadd.f32 %v1445_v29, %v2858_v54  ;;  %v2922_v54 = vsub.s32 5, %v3195_v27 }
 0x595   :  { %v1400_v31 = vpop.permute.xlu1 %1399 }
 0x596   :  { %v1447_v19 = vmul.f32 %v1433_v33, %v1400_v31  ;;  %v1488_v61 = vpop.permute.xlu0 %1487  ;;  %v1533_v30 = vadd.f32 %v1525_v38, %v1453_v59  ;;  %v1589_v58 = vrot.slane %v2801_v46, %v2922_v54  ;;  %v1597_v36 = vrot.slane %v2812_v51, %v2922_v54 }
 0x597   :  { %v1529_v34 = vmul.f32 %v1521_v20, %v1488_v61  ;;  %v1573_v48 = vrot.slane %v2761_v42, %v2922_v54  ;;  %v1581_v33 = vrot.slane %v2785_v41, %v2922_v54 }
 0x598   :  { %v1455_v6 = vadd.f32 %v1447_v19, %v2866_v10  ;;  %v1577_v10 = vrot.slane %v2772_v24, %v2922_v54 }
 0x599   :  { %v1408_v39 = vpop.permute.xlu1 %1407 }
 0x59a   :  { %v1449_v35 = vmul.f32 %v1441_v14, %v1408_v39  ;;  %v1535_v32 = vadd.f32 %v1527_v18, %v1455_v6  ;;  %v1665_v14 = vrot.slane %v2777_v22, %v2945_v8 }
 0x59b   :  { %v1544_v16 = vpop.permute.xlu0 %1543 }
 0x59c   :  { %v1457_v4 = vadd.f32 %v1449_v35, %v2876_v21  ;;  %v1603_v47 = vmul.f32 %v1577_v10, %v1544_v16 }
 0x59e   :  { %v1464_v13 = vpop.permute.xlu1 %1463  ;;  %v2927_v5 = vadd.f32 %v1529_v34, %v1457_v4  ;;  %v1585_v34 = vrot.slane %v2777_v22, %v2922_v54  ;;  %v1593_v4 = vrot.slane %v2790_v1, %v2922_v54 }
 0x59f   :  { %v1523_v62 = vmul.f32 %v1497_v2, %v1464_v13  ;;  %v1556_v56 = vpop.permute.xlu0 %1555  ;;  %v1673_v13 = vrot.slane %v2790_v1, %v2945_v8 }
 0x5a0   :  { %v1606_v9 = vmul.f32 %v1589_v58, %v1556_v56 }
 0x5a1   :  { %v1531_v55 = vadd.f32 %v1523_v62, %v1451_v57 }
 0x5a2   :  { %v1468_v44 = vpop.permute.xlu1 %1467 }
 0x5a3   :  { %v1524_v3 = vmul.f32 %v1501_v40, %v1468_v44  ;;  %v1564_v37 = vpop.permute.xlu0 %1563  ;;  %v2933_v21 = vadd.f32 %v1603_v47, %v1531_v55  ;;  %v1601_v40 = vrot.slane %v2803_v52, %v2922_v54 }
 0x5a5   :  { %v1532_v43 = vadd.f32 %v1524_v3, %v1452_v0  ;;  %v1608_v0 = vmul.f32 %v1597_v36, %v1564_v37 }
 0x5a6   :  { %v1476_v50 = vpop.permute.xlu1 %1475 }
 0x5a7   :  { %v1526_v11 = vmul.f32 %v1509_v63, %v1476_v50 }
 0x5a8   :  { %v1620_v12 = vpop.permute.xlu0 %1619 }
 0x5a9   :  { %v1534_v57 = vadd.f32 %v1526_v11, %v2891_v49  ;;  %v1682_v18 = vmul.f32 %v1653_v45, %v1620_v12 }
 0x5aa   :  { %v1484_v17 = vpop.permute.xlu1 %1483 }
 0x5ab   :  { %v1528_v7 = vmul.f32 %v1517_v26, %v1484_v17  ;;  %v1614_v15 = vadd.f32 %v1606_v9, %v1534_v57 }
 0x5ac   :  { %v1632_v38 = vpop.permute.xlu0 %1631 }
 0x5ad   :  { %v1536_v60 = vadd.f32 %v1528_v7, %v2899_v53  ;;  %v1685_v16 = vmul.f32 %v1665_v14, %v1632_v38 }
 0x5af   :  { %v1540_v49 = vpop.permute.xlu1 %1539  ;;  %v2950_v25 = vadd.f32 %v1608_v0, %v1536_v60  ;;  %v1669_v60 = vrot.slane %v2801_v46, %v2945_v8 }
 0x5b0   :  { %v1602_v29 = vmul.f32 %v1573_v48, %v1540_v49  ;;  %v1640_v23 = vpop.permute.xlu0 %1639 }
 0x5b1   :  { %v1687_v47 = vmul.f32 %v1673_v13, %v1640_v23 }
 0x5b2   :  { %v1610_v59 = vadd.f32 %v1602_v29, %v2907_v28 }
 0x5b3   :  { %v1548_v31 = vpop.permute.xlu1 %1547 }
 0x5b4   :  { %v1604_v20 = vmul.f32 %v1581_v33, %v1548_v31  ;;  %v1648_v53 = vpop.permute.xlu0 %1647  ;;  %v2957_v19 = vadd.f32 %v1682_v18, %v1610_v59 }
 0x5b6   :  { %v1612_v61 = vadd.f32 %v1604_v20, %v1532_v43  ;;  %v2976_v43 = vsub.s32 7, %v3195_v27  ;;  %v1661_v27 = vrot.slane %v2785_v41, %v2945_v8 }
 0x5b7   :  { %v1552_v6 = vpop.permute.xlu1 %1551 }
 0x5b8   :  { %v1605_v39 = vmul.f32 %v1585_v34, %v1552_v6  ;;  %v1737_v54 = vrot.slane %v2772_v24, %v2976_v43  ;;  %v1757_v59 = vrot.slane %v2812_v51, %v2976_v43 }
 0x5b9   :  { %v1704_v35 = vpop.permute.xlu0 %1703 }
 0x5ba   :  { %v1613_v28 = vadd.f32 %v1605_v39, %v1533_v30  ;;  %v1681_v30 = vrot.slane %v2803_v52, %v2945_v8  ;;  %v1763_v26 = vmul.f32 %v1737_v54, %v1704_v35  ;;  %v1741_v35 = vrot.slane %v2785_v41, %v2976_v43 }
 0x5bb   :  { %v1560_v2 = vpop.permute.xlu1 %1559 }
 0x5bc   :  { %v1607_v10 = vmul.f32 %v1593_v4, %v1560_v2  ;;  %v2967_v62 = vadd.f32 %v1685_v16, %v1613_v28  ;;  %v1689_v50 = vmul.f32 %v1681_v30, %v1648_v53 }
 0x5bd   :  { %v1716_v56 = vpop.permute.xlu0 %1715 }
 0x5be   :  { %v1615_v55 = vadd.f32 %v1607_v10, %v1535_v32  ;;  %v1657_v32 = vrot.slane %v2772_v24, %v2945_v8  ;;  %v1749_v24 = vrot.slane %v2801_v46, %v2976_v43  ;;  %v1733_v46 = vrot.slane %v2761_v42, %v2976_v43 }
 0x5bf   :  { %v1568_v44 = vpop.permute.xlu1 %1567  ;;  %v1745_v10 = vrot.slane %v2777_v22, %v2976_v43 }
 0x5c0   :  { %v1609_v3 = vmul.f32 %v1601_v40, %v1568_v44  ;;  %v2973_v37 = vadd.f32 %v1687_v47, %v1615_v55  ;;  %v1766_v45 = vmul.f32 %v1749_v24, %v1716_v56  ;;  %v1753_v40 = vrot.slane %v2790_v1, %v2976_v43 }
 0x5c1   :  { %v1724_v63 = vpop.permute.xlu0 %1723 }
 0x5c2   :  { %v1617_v58 = vadd.f32 %v1609_v3, %v2927_v5  ;;  %v1768_v20 = vmul.f32 %v1757_v59, %v1724_v63  ;;  %v1761_v3 = vrot.slane %v2803_v52, %v2976_v43 }
 0x5c4   :  { %v1624_v11 = vpop.permute.xlu1 %1623  ;;  %v1697_v12 = vadd.f32 %v1689_v50, %v1617_v58 }
 0x5c5   :  { %v1683_v9 = vmul.f32 %v1657_v32, %v1624_v11  ;;  %v1795_v57 = vpop.permute.xlu0 %1794 }
 0x5c7   :  { %v1691_v17 = vadd.f32 %v1683_v9, %v2933_v21  ;;  %v1677_v21 = vrot.slane %v2812_v51, %v2945_v8 }
 0x5c8   :  { %v1628_v36 = vpop.permute.xlu1 %1627 }
 0x5c9   :  { %v1684_v7 = vmul.f32 %v1661_v27, %v1628_v36  ;;  %v1771_v38 = vadd.f32 %v1763_v26, %v1691_v17  ;;  %v1799_v5 = vpop.permute.xlu0 %1798 }
 0x5cb   :  { %v1692_v0 = vadd.f32 %v1684_v7, %v1612_v61  ;;  %v3196_v61 = vld [vmem:[#allocation10_spill] sm:$0xff] }
 0x5cc   :  { %v1636_v48 = vpop.permute.xlu1 %1635 }
 0x5cd   :  { %v1686_v49 = vmul.f32 %v1669_v60, %v1636_v48  ;;  %v1803_v18 = vpop.permute.xlu0 %1802 }
 0x5cf   :  { %v1694_v29 = vadd.f32 %v1686_v49, %v1614_v15 }
 0x5d0   :  { %v1644_v23 = vpop.permute.xlu1 %1643 }
 0x5d1   :  { %v1688_v33 = vmul.f32 %v1677_v21, %v1644_v23  ;;  %v1774_v31 = vadd.f32 %v1766_v45, %v1694_v29  ;;  %v1807_v39 = vpop.permute.xlu0 %1806 }
 0x5d3   :  { %v1696_v53 = vadd.f32 %v1688_v33, %v2950_v25  ;;  %v1782_v34 = vadd.f32 %v1774_v31, %v3196_v61 }
 0x5d5   :  { %v1822_v15 = vadd.f32 %v1803_v18, %v1782_v34  ;;  %v1700_v6 = vpop.permute.xlu1 %1699  ;;  %v1776_v14 = vadd.f32 %v1768_v20, %v1696_v53 }
 0x5d6   :  { %v1762_v8 = vmul.f32 %v1733_v46, %v1700_v6 }
 0x5d7   :  { %1831 = vst.msk [vmem:[%s3055_s7 + $0x10] sm:$0xf] %vm1826_vm0, %v1822_v15  ;;  %v1784_v51 = vadd.f32 %v1776_v14, %v3196_v61 }
 0x5d8   :  { %v1770_v25 = vadd.f32 %v1762_v8, %v2957_v19 }
 0x5d9   :  { %v1824_v16 = vadd.f32 %v1807_v39, %v1784_v51  ;;  %v1708_v28 = vpop.permute.xlu1 %1707 }
 0x5da   :  { %v1778_v42 = vadd.f32 %v1770_v25, %v3196_v61  ;;  %v1764_v4 = vmul.f32 %v1741_v35, %v1708_v28 }
 0x5db   :  { %1833 = vst.msk [vmem:[%s3055_s7 + $0x18] sm:$0xf] %vm1826_vm0, %v1824_v16 }
 0x5dc   :  { %v1818_v2 = vadd.f32 %v1795_v57, %v1778_v42  ;;  %v1772_v13 = vadd.f32 %v1764_v4, %v1692_v0 }
 0x5dd   :  { %v1712_v56 = vpop.permute.xlu1 %1711 }
 0x5de   :  { %1827 = vst.msk [vmem:[%s3055_s7] sm:$0xf] %vm1826_vm0, %v1818_v2  ;;  %v1780_v41 = vadd.f32 %v1772_v13, %v3196_v61  ;;  %v1765_v19 = vmul.f32 %v1745_v10, %v1712_v56 }
 0x5e0   :  { %v1820_v47 = vadd.f32 %v1799_v5, %v1780_v41  ;;  %v1773_v55 = vadd.f32 %v1765_v19, %v2967_v62  ;;  %v1779_v62 = vadd.f32 %v1771_v38, %v3196_v61 }
 0x5e1   :  { %v1720_v44 = vpop.permute.xlu1 %1719 }
 0x5e2   :  { %1829 = vst.msk [vmem:[%s3055_s7 + $0x8] sm:$0xf] %vm1826_vm0, %v1820_v47  ;;  %v1767_v22 = vmul.f32 %v1753_v40, %v1720_v44  ;;  %v1781_v1 = vadd.f32 %v1773_v55, %v3196_v61 }
 0x5e4   :  { %v1775_v30 = vadd.f32 %v1767_v22, %v2973_v37 }
 0x5e5   :  { %v1728_v63 = vpop.permute.xlu1 %1727 }
 0x5e6   :  { %v1769_v50 = vmul.f32 %v1761_v3, %v1728_v63  ;;  %v1783_v52 = vadd.f32 %v1775_v30, %v3196_v61 }
 0x5e8   :  { %v1777_v58 = vadd.f32 %v1769_v50, %v1697_v12 }
 0x5e9   :  { %v1797_v32 = vpop.permute.xlu1 %1796 }
 0x5ea   :  { %v1819_v11 = vadd.f32 %v1797_v32, %v1779_v62  ;;  %v1785_v12 = vadd.f32 %v1777_v58, %v3196_v61 }
 0x5ec   :  { %1828 = vst.msk [vmem:[%s3055_s7 + $0x4] sm:$0xf] %vm1826_vm0, %v1819_v11 }
 0x5ed   :  { %v1801_v54 = vpop.permute.xlu1 %1800 }
 0x5ee   :  { %v1821_v9 = vadd.f32 %v1801_v54, %v1781_v1 }
 0x5f0   :  { %1830 = vst.msk [vmem:[%s3055_s7 + $0xc] sm:$0xf] %vm1826_vm0, %v1821_v9 }
 0x5f1   :  { %v1805_v37 = vpop.permute.xlu1 %1804 }
 0x5f2   :  { %v1823_v43 = vadd.f32 %v1805_v37, %v1783_v52 }
 0x5f4   :  { %1832 = vst.msk [vmem:[%s3055_s7 + $0x14] sm:$0xf] %vm1826_vm0, %v1823_v43 }
 0x5f5   :  { %v1809_v57 = vpop.permute.xlu1 %1808 }
 0x5f6   :  { %v1825_v26 = vadd.f32 %v1809_v57, %v1785_v12 }
 0x5f8   :  { %1834 = vst.msk [vmem:[%s3055_s7 + $0x1c] sm:$0xf] %vm1826_vm0, %v1825_v26 }

</bundles_post_ra>
